<compile_context>
chip_gen: v7x
topology: tpu7x:2x2x1
jax: 0.10.0
libtpu: 0.0.40
codegen_flags: <defaults>
</compile_context>

<pallas_src>
import jax
import jax.numpy as jnp
from jax.experimental import pallas as pl
from jax.experimental.pallas import tpu as pltpu

# ----------------------------- configuration -----------------------------
B = 2            # batch
N = 16           # num nodes
L_LONG = 24      # long history length
PATCH_LEN = 4    # patch length inside Mask
P = L_LONG // PATCH_LEN
SHORT_LEN = 8    # short_term_len
C_IN = 3         # input channels of history_data
D = 32           # Mask embedding dim
H = 64           # backend hidden dim
NODE_DIM = 8     # adaptive adjacency embedding dim
L_OUT = 8        # prediction horizon

ROWS = P * B * N          # 192 flattened (patch, batch, node) rows
GN = B * N                # 32 (batch, node) rows


# --------------------------- in-kernel helpers ---------------------------
def _ln(x, g, b, eps=1e-5):
    mu = jnp.mean(x, axis=-1, keepdims=True)
    var = jnp.mean((x - mu) * (x - mu), axis=-1, keepdims=True)
    return (x - mu) * jax.lax.rsqrt(var + eps) * g + b


def _softmax_rows(x):
    x = x - jnp.max(x, axis=-1, keepdims=True)
    e = jnp.exp(x)
    return e * pl.reciprocal(jnp.sum(e, axis=-1, keepdims=True), approx=True)


# ----------------------------- Pallas kernels -----------------------------
def _mask_fused_kernel(x_ref, pos_ref, wpe_ref, bpe_ref, wqkv_ref, bqkv_ref,
                       wo_ref, bo_ref, ln1g_ref, ln1b_ref, w1_ref, b1_ref,
                       w2_ref, b2_ref, ln2g_ref, ln2b_ref, bias_ref, out_ref):
    """Fused Mask encoder. grid axis 0 = {tmae, smae} ("parallel")."""
    f32 = jnp.float32
    bf16 = jnp.bfloat16
    last0 = (P - 1) * B * N          # first row of the last patch block

    # patch embedding + positional encoding (all patches; K/V need them)
    x = x_ref[...]                                               # [192, 4] f32
    h = jnp.dot(x.astype(bf16), wpe_ref[0],
                preferred_element_type=f32) + bpe_ref[0]         # [192, D]
    h = h + pos_ref[0]

    # fused QKV projection (single MXU push, lane width 3D=96)
    qkv = jnp.dot(h.astype(bf16), wqkv_ref[0],
                  preferred_element_type=f32) + bqkv_ref[0]      # [192, 3D]
    k = qkv[:, D:2 * D]                                          # [192, D]
    v = qkv[:, 2 * D:3 * D]                                      # [192, D]
    q_last = qkv[last0:, 0:D]                                    # [32, D]
    h_last = h[last0:, :]                                        # [32, D]

    # block-diagonal-masked attention as one matmul pair
    scale = 1.0 / (D ** 0.5)
    s = jax.lax.dot_general(q_last.astype(bf16), k.astype(bf16),
                            (((1,), (1,)), ((), ())),
                            preferred_element_type=f32) * scale   # [32, 192]
    s = s + bias_ref[0]                                           # -1e9 off-block
    attn = _softmax_rows(s)
    ctx = jnp.dot(attn.astype(bf16), v.astype(bf16),
                  preferred_element_type=f32)                     # [32, D]

    # output projection + residual + LN
    a = jnp.dot(ctx.astype(bf16), wo_ref[0],
                preferred_element_type=f32) + bo_ref[0]
    h1 = _ln(h_last + a, ln1g_ref[0], ln1b_ref[0])

    # FFN + residual + LN (only the last-patch rows that are consumed)
    f = jnp.maximum(jnp.dot(h1.astype(bf16), w1_ref[0],
                            preferred_element_type=f32) + b1_ref[0], 0.0)
    f = jnp.dot(f.astype(bf16), w2_ref[0],
                preferred_element_type=f32) + b2_ref[0]
    out_ref[0] = _ln(h1 + f, ln2g_ref[0], ln2b_ref[0])            # [32, D]


def _backend_fused_kernel(x_ref, hid_ref, win_ref, bin_ref, e1_ref, e2_ref,
                          wend1_ref, bend1_ref, wend2_ref, bend2_ref, out_ref):
    """Fused GraphWaveNet-style backend: proj + adaptive adj + gconv + head."""
    f32 = jnp.float32
    bf16 = jnp.bfloat16

    x = x_ref[...]                                                # [32, 24]
    h0 = jnp.maximum(jnp.dot(x.astype(bf16), win_ref[...],
                             preferred_element_type=f32)
                     + bin_ref[...], 0.0)                         # [32, H]

    # adaptive adjacency A = softmax(relu(E1 @ E2^T))
    logits = jax.lax.dot_general(e1_ref[...], e2_ref[...],
                                 (((1,), (1,)), ((), ())),
                                 preferred_element_type=f32)      # [N, N]
    adj = _softmax_rows(jnp.maximum(logits, 0.0))

    # graph conv: per-batch A @ h0 (static slices, 2D MXU matmuls only)
    hg_parts = []
    for b in range(B):
        hb = h0[b * N:(b + 1) * N, :]                             # [N, H]
        hg_parts.append(jnp.dot(adj.astype(bf16), hb.astype(bf16),
                                preferred_element_type=f32))
    hg = jnp.concatenate(hg_parts, axis=0)                        # [32, H]
    hgc = jnp.maximum(h0 + hg, 0.0)

    # regression head over [h | hidden_states]  (lane-dense 128 features)
    z = jnp.concatenate([hgc, hid_ref[...]], axis=-1)             # [32, H+2D]
    z1 = jnp.maximum(jnp.dot(z.astype(bf16), wend1_ref[...],
                             preferred_element_type=f32)
                     + bend1_ref[...], 0.0)                       # [32, H]
    out_ref[...] = jnp.dot(z1.astype(bf16), wend2_ref[...],
                           preferred_element_type=f32) + bend2_ref[...]


# ----------------------------- pallas_call wrappers -----------------------------
def mask_fused_call(mp, x_rows):
    def full2(shape):
        return pl.BlockSpec(shape, lambda i: (0, 0))

    def stk3(shape):
        return pl.BlockSpec((1,) + shape, lambda i: (i, 0, 0))

    return pl.pallas_call(
        _mask_fused_kernel,
        grid=(2,),
        out_shape=jax.ShapeDtypeStruct((2, GN, D), jnp.float32),
        in_specs=[
            full2((ROWS, PATCH_LEN)),      # x (shared by both branches)
            stk3((ROWS, D)),               # pos
            stk3((PATCH_LEN, D)),          # W_pe
            stk3((1, D)),                  # b_pe
            stk3((D, 3 * D)),              # W_qkv
            stk3((1, 3 * D)),              # b_qkv
            stk3((D, D)),                  # W_o
            stk3((1, D)),                  # b_o
            stk3((1, D)), stk3((1, D)),    # ln1 gamma/beta
            stk3((D, 4 * D)), stk3((1, 4 * D)),   # W1/b1
            stk3((4 * D, D)), stk3((1, D)),       # W2/b2
            stk3((1, D)), stk3((1, D)),    # ln2 gamma/beta
            stk3((GN, ROWS)),              # attention bias mask
        ],
        out_specs=stk3((GN, D)),
        compiler_params=pltpu.CompilerParams(
            dimension_semantics=("parallel",)),
    )(x_rows, mp['pos'], mp['wpe'], mp['bpe'], mp['wqkv'], mp['bqkv'],
      mp['wo'], mp['bo'], mp['ln1g'], mp['ln1b'],
      mp['w1'], mp['b1'], mp['w2'], mp['b2'],
      mp['ln2g'], mp['ln2b'], mp['bias'])


def backend_fused_call(bp, x_rows, hidden):
    def full(shape):
        return pl.BlockSpec(shape, lambda i: (0, 0))

    return pl.pallas_call(
        _backend_fused_kernel,
        grid=(1,),
        out_shape=jax.ShapeDtypeStruct((GN, L_OUT), jnp.float32),
        in_specs=[
            full((GN, SHORT_LEN * C_IN)),
            full((GN, 2 * D)),
            full((SHORT_LEN * C_IN, H)),
            full((1, H)),
            full((N, NODE_DIM)),
            full((N, NODE_DIM)),
            full((H + 2 * D, H)),
            full((1, H)),
            full((H, L_OUT)),
            full((1, L_OUT)),
        ],
        out_specs=full((GN, L_OUT)),
    )(x_rows, hidden,
      bp['win'], bp['bin'], bp['e1'], bp['e2'],
      bp['wend1'], bp['bend1'], bp['wend2'], bp['bend2'])


# ----------------------------- parameter init -----------------------------
def _init_mask_params(key):
    ks = jax.random.split(key, 8)
    s = 0.05
    return {
        'W_pe': s * jax.random.normal(ks[0], (PATCH_LEN, D)),
        'b_pe': jnp.zeros((D,)),
        'pos_emb': s * jax.random.normal(ks[1], (P, D)),
        'Wq': s * jax.random.normal(ks[2], (D, D)), 'bq': jnp.zeros((D,)),
        'Wk': s * jax.random.normal(ks[3], (D, D)), 'bk': jnp.zeros((D,)),
        'Wv': s * jax.random.normal(ks[4], (D, D)), 'bv': jnp.zeros((D,)),
        'Wo': s * jax.random.normal(ks[5], (D, D)), 'bo': jnp.zeros((D,)),
        'ln1_g': jnp.ones((D,)), 'ln1_b': jnp.zeros((D,)),
        'W1': s * jax.random.normal(ks[6], (D, 4 * D)), 'b1': jnp.zeros((4 * D,)),
        'W2': s * jax.random.normal(ks[7], (4 * D, D)), 'b2': jnp.zeros((D,)),
        'ln2_g': jnp.ones((D,)), 'ln2_b': jnp.zeros((D,)),
    }


def _init_backend_params(key):
    ks = jax.random.split(key, 5)
    s = 0.05
    return {
        'W_in': s * jax.random.normal(ks[0], (SHORT_LEN * C_IN, H)),
        'b_in': jnp.zeros((H,)),
        'E1': s * jax.random.normal(ks[1], (N, NODE_DIM)),
        'E2': s * jax.random.normal(ks[2], (N, NODE_DIM)),
        'W_end1': s * jax.random.normal(ks[3], (H + 2 * D, H)),
        'b_end1': jnp.zeros((H,)),
        'W_end2': s * jax.random.normal(ks[4], (H, L_OUT)),
        'b_end2': jnp.zeros((L_OUT,)),
    }


def _attn_bias():
    """Additive attention biases [2, GN, ROWS]: [0]=temporal, [1]=spatial."""
    kk = jnp.arange(ROWS)
    qq = jnp.arange(GN)
    neg = jnp.float32(-1e9)
    # temporal: query (b, n) at last patch attends over all patches of same (b, n)
    same_bn = (kk[None, :] % GN) == qq[:, None]
    bias_t = jnp.where(same_bn, 0.0, neg).astype(jnp.float32)
    # spatial: query (b, n) at last patch attends over all nodes of same batch
    # within the same (last) patch
    last_patch = (kk[None, :] // GN) == (P - 1)
    same_batch = ((kk[None, :] % GN) // N) == (qq[:, None] // N)
    bias_s = jnp.where(last_patch & same_batch, 0.0, neg).astype(jnp.float32)
    return jnp.stack([bias_t, bias_s])


def _fuse_mask(tm, sm):
    bf16, f32 = jnp.bfloat16, jnp.float32

    def stk(key, dt=f32):
        return jnp.stack([tm[key], sm[key]]).astype(dt)

    pos = jnp.stack([jnp.repeat(tm['pos_emb'], GN, axis=0),
                     jnp.repeat(sm['pos_emb'], GN, axis=0)]).astype(f32)
    wqkv = jnp.stack(
        [jnp.concatenate([tm['Wq'], tm['Wk'], tm['Wv']], axis=1),
         jnp.concatenate([sm['Wq'], sm['Wk'], sm['Wv']], axis=1)]).astype(bf16)
    bqkv = jnp.stack(
        [jnp.concatenate([tm['bq'], tm['bk'], tm['bv']]),
         jnp.concatenate([sm['bq'], sm['bk'], sm['bv']])]
    ).reshape(2, 1, 3 * D).astype(f32)
    return {
        'wpe': stk('W_pe', bf16),
        'bpe': stk('b_pe').reshape(2, 1, D),
        'pos': pos,
        'wqkv': wqkv, 'bqkv': bqkv,
        'wo': stk('Wo', bf16), 'bo': stk('bo').reshape(2, 1, D),
        'ln1g': stk('ln1_g').reshape(2, 1, D),
        'ln1b': stk('ln1_b').reshape(2, 1, D),
        'w1': stk('W1', bf16), 'b1': stk('b1').reshape(2, 1, 4 * D),
        'w2': stk('W2', bf16), 'b2': stk('b2').reshape(2, 1, D),
        'ln2g': stk('ln2_g').reshape(2, 1, D),
        'ln2b': stk('ln2_b').reshape(2, 1, D),
        'bias': _attn_bias(),
    }


def _fuse_backend(bk):
    bf16, f32 = jnp.bfloat16, jnp.float32
    return {
        'win': bk['W_in'].astype(bf16),
        'bin': bk['b_in'].reshape(1, H).astype(f32),
        'e1': bk['E1'].astype(bf16),
        'e2': bk['E2'].astype(bf16),
        'wend1': bk['W_end1'].astype(bf16),
        'bend1': bk['b_end1'].reshape(1, H).astype(f32),
        'wend2': bk['W_end2'].astype(bf16),
        'bend2': bk['b_end2'].reshape(1, L_OUT).astype(f32),
    }


def init_params(key):
    k1, k2, k3 = jax.random.split(key, 3)
    return {
        'mask': _fuse_mask(_init_mask_params(k1), _init_mask_params(k2)),
        'backend': _fuse_backend(_init_backend_params(k3)),
    }


# ----------------------------- model forward -----------------------------
def stdmae_forward(params, history_data):
    """Faithful STDMAE.forward.  history_data: [B, L, N, 3] -> [B, N, L_OUT, 1]."""
    long_history_data = history_data
    short_term_history = history_data[:, -SHORT_LEN:, :, :]

    # --- Mask encoders (tmae + smae fused into one pallas_call) ---
    # rows laid out as (patch, batch, node) so the last patch is a contiguous
    # trailing block of GN rows
    x0 = long_history_data[..., 0]                                 # [B, L, N]
    xp = x0.reshape(B, P, PATCH_LEN, N)
    xp = jnp.transpose(xp, (1, 0, 3, 2)).reshape(ROWS, PATCH_LEN)  # [192, 4]

    hidden_lp = mask_fused_call(params['mask'], xp)                # [2, GN, D]
    # cat((hidden_states_t, hidden_states_s), -1)[:, :, -1, :]
    hidden_states = jnp.concatenate([hidden_lp[0], hidden_lp[1]], axis=-1)

    # --- backend (GraphWaveNet-style, single fused pallas_call) ---
    xs = jnp.transpose(short_term_history, (0, 2, 1, 3)).reshape(
        GN, SHORT_LEN * C_IN)
    out = backend_fused_call(params['backend'], xs, hidden_states)  # [GN, L_OUT]
    out = out.reshape(B, N, L_OUT)

    # backend output in [B, L_OUT, N, 1], then the original wrapper gymnastics
    y_back = jnp.transpose(out, (0, 2, 1))[..., None]               # [B, L_OUT, N, 1]
    y_hat = jnp.swapaxes(y_back, 1, 2)[..., None]                   # transpose(1,2).unsqueeze(-1)
    y_hat = y_hat[:, :, :, 0, :]                                    # [B, N, L_OUT, 1]
    return y_hat


# --------------------------------- main ---------------------------------
if __name__ == "__main__":
    key = jax.random.PRNGKey(0)
    k_param, k_data = jax.random.split(key)
    params = init_params(k_param)
    history_data = jax.random.normal(k_data, (B, L_LONG, N, C_IN),
                                     dtype=jnp.float32)

    fwd = jax.jit(stdmae_forward)
    y = fwd(params, history_data)
    y = jax.block_until_ready(y)

    assert y.shape == (B, N, L_OUT, 1), y.shape
    assert jnp.all(jnp.isfinite(y))
    print("KERNEL_OK")
</pallas_src>

<mosaic_0001>
module attributes {stable_mosaic.version = 11 : i64} {
  func.func @_mask_fused_kernel(%arg0: i32, %arg1: memref<192x4xf32, #tpu.memory_space<vmem>>, %arg2: memref<1x192x32xf32, #tpu.memory_space<vmem>>, %arg3: memref<1x4x32xbf16, #tpu.memory_space<vmem>>, %arg4: memref<1x1x32xf32, #tpu.memory_space<vmem>>, %arg5: memref<1x32x96xbf16, #tpu.memory_space<vmem>>, %arg6: memref<1x1x96xf32, #tpu.memory_space<vmem>>, %arg7: memref<1x32x32xbf16, #tpu.memory_space<vmem>>, %arg8: memref<1x1x32xf32, #tpu.memory_space<vmem>>, %arg9: memref<1x1x32xf32, #tpu.memory_space<vmem>>, %arg10: memref<1x1x32xf32, #tpu.memory_space<vmem>>, %arg11: memref<1x32x128xbf16, #tpu.memory_space<vmem>>, %arg12: memref<1x1x128xf32, #tpu.memory_space<vmem>>, %arg13: memref<1x128x32xbf16, #tpu.memory_space<vmem>>, %arg14: memref<1x1x32xf32, #tpu.memory_space<vmem>>, %arg15: memref<1x1x32xf32, #tpu.memory_space<vmem>>, %arg16: memref<1x1x32xf32, #tpu.memory_space<vmem>>, %arg17: memref<1x32x192xf32, #tpu.memory_space<vmem>>, %arg18: memref<1x32x32xf32, #tpu.memory_space<vmem>>) attributes {dimension_semantics = [#tpu.dimension_semantics<parallel>], iteration_bounds = array<i64: 2>, scalar_prefetch = 0 : i64, scratch_operands = 0 : i64, tpu.core_type = #tpu.core_type<tc>, window_params = [{pipeline_mode = #tpu.pipeline_mode<synchronous>, transform_indices = @transform_0, window_bounds = array<i64: 192, 4>}, {transform_indices = @transform_1, window_bounds = array<i64: 1, 192, 32>}, {transform_indices = @transform_2, window_bounds = array<i64: 1, 4, 32>}, {transform_indices = @transform_3, window_bounds = array<i64: 1, 1, 32>}, {transform_indices = @transform_4, window_bounds = array<i64: 1, 32, 96>}, {transform_indices = @transform_5, window_bounds = array<i64: 1, 1, 96>}, {transform_indices = @transform_6, window_bounds = array<i64: 1, 32, 32>}, {transform_indices = @transform_7, window_bounds = array<i64: 1, 1, 32>}, {transform_indices = @transform_8, window_bounds = array<i64: 1, 1, 32>}, {transform_indices = @transform_9, window_bounds = array<i64: 1, 1, 32>}, {transform_indices = @transform_10, window_bounds = array<i64: 1, 32, 128>}, {transform_indices = @transform_11, window_bounds = array<i64: 1, 1, 128>}, {transform_indices = @transform_12, window_bounds = array<i64: 1, 128, 32>}, {transform_indices = @transform_13, window_bounds = array<i64: 1, 1, 32>}, {transform_indices = @transform_14, window_bounds = array<i64: 1, 1, 32>}, {transform_indices = @transform_15, window_bounds = array<i64: 1, 1, 32>}, {transform_indices = @transform_16, window_bounds = array<i64: 1, 32, 192>}, {transform_indices = @transform_17, window_bounds = array<i64: 1, 32, 32>}]} {
    %c0 = arith.constant 0 : index
    %c0_0 = arith.constant 0 : index
    %0 = vector.load %arg1[%c0, %c0_0] : memref<192x4xf32, #tpu.memory_space<vmem>>, vector<192x4xf32>
    %1 = arith.truncf %0 : vector<192x4xf32> to vector<192x4xbf16>
    %c0_1 = arith.constant 0 : index
    %c0_2 = arith.constant 0 : index
    %c0_3 = arith.constant 0 : index
    %2 = vector.load %arg3[%c0_1, %c0_2, %c0_3] : memref<1x4x32xbf16, #tpu.memory_space<vmem>>, vector<1x4x32xbf16>
    %3 = vector.shape_cast %2 : vector<1x4x32xbf16> to vector<4x32xbf16>
    %cst = arith.constant dense<0.000000e+00> : vector<192x32xf32>
    %4 = tpu.matmul %1, %3, %cst {dimension_numbers = #tpu.dot_dimension_numbers<[1], [0], [0], [1], [0, 0, 1, 1], [], []>} : vector<192x4xbf16>, vector<4x32xbf16>, vector<192x32xf32> -> vector<192x32xf32>
    %c0_4 = arith.constant 0 : index
    %c0_5 = arith.constant 0 : index
    %c0_6 = arith.constant 0 : index
    %5 = vector.load %arg4[%c0_4, %c0_5, %c0_6] : memref<1x1x32xf32, #tpu.memory_space<vmem>>, vector<1x1x32xf32>
    %6 = vector.shape_cast %5 : vector<1x1x32xf32> to vector<1x32xf32>
    %7 = vector.broadcast %6 : vector<1x32xf32> to vector<192x32xf32>
    %8 = arith.addf %4, %7 : vector<192x32xf32>
    %c0_7 = arith.constant 0 : index
    %c0_8 = arith.constant 0 : index
    %c0_9 = arith.constant 0 : index
    %9 = vector.load %arg2[%c0_7, %c0_8, %c0_9] : memref<1x192x32xf32, #tpu.memory_space<vmem>>, vector<1x192x32xf32>
    %10 = vector.shape_cast %9 : vector<1x192x32xf32> to vector<192x32xf32>
    %11 = arith.addf %8, %10 : vector<192x32xf32>
    %12 = arith.truncf %11 : vector<192x32xf32> to vector<192x32xbf16>
    %c0_10 = arith.constant 0 : index
    %c0_11 = arith.constant 0 : index
    %c0_12 = arith.constant 0 : index
    %13 = vector.load %arg5[%c0_10, %c0_11, %c0_12] : memref<1x32x96xbf16, #tpu.memory_space<vmem>>, vector<1x32x96xbf16>
    %14 = vector.shape_cast %13 : vector<1x32x96xbf16> to vector<32x96xbf16>
    %cst_13 = arith.constant dense<0.000000e+00> : vector<192x96xf32>
    %15 = tpu.matmul %12, %14, %cst_13 {dimension_numbers = #tpu.dot_dimension_numbers<[1], [0], [0], [1], [0, 0, 1, 1], [], []>} : vector<192x32xbf16>, vector<32x96xbf16>, vector<192x96xf32> -> vector<192x96xf32>
    %c0_14 = arith.constant 0 : index
    %c0_15 = arith.constant 0 : index
    %c0_16 = arith.constant 0 : index
    %16 = vector.load %arg6[%c0_14, %c0_15, %c0_16] : memref<1x1x96xf32, #tpu.memory_space<vmem>>, vector<1x1x96xf32>
    %17 = vector.shape_cast %16 : vector<1x1x96xf32> to vector<1x96xf32>
    %18 = vector.broadcast %17 : vector<1x96xf32> to vector<192x96xf32>
    %19 = arith.addf %15, %18 : vector<192x96xf32>
    %20 = vector.extract_strided_slice %19 {offsets = [0, 32], sizes = [192, 32], strides = [1, 1]} : vector<192x96xf32> to vector<192x32xf32>
    %21 = vector.extract_strided_slice %19 {offsets = [0, 64], sizes = [192, 32], strides = [1, 1]} : vector<192x96xf32> to vector<192x32xf32>
    %22 = vector.extract_strided_slice %19 {offsets = [160, 0], sizes = [32, 32], strides = [1, 1]} : vector<192x96xf32> to vector<32x32xf32>
    %23 = vector.extract_strided_slice %11 {offsets = [160, 0], sizes = [32, 32], strides = [1, 1]} : vector<192x32xf32> to vector<32x32xf32>
    %24 = arith.truncf %22 : vector<32x32xf32> to vector<32x32xbf16>
    %25 = arith.truncf %20 : vector<192x32xf32> to vector<192x32xbf16>
    %cst_17 = arith.constant dense<0.000000e+00> : vector<32x192xf32>
    %26 = tpu.matmul %24, %25, %cst_17 {dimension_numbers = #tpu.dot_dimension_numbers<[1], [1], [0], [0], [0, 0, 1, 0], [], []>} : vector<32x32xbf16>, vector<192x32xbf16>, vector<32x192xf32> -> vector<32x192xf32>
    %cst_18 = arith.constant 0.176776692 : f32
    %27 = vector.broadcast %cst_18 : f32 to vector<32x192xf32>
    %28 = arith.mulf %26, %27 : vector<32x192xf32>
    %c0_19 = arith.constant 0 : index
    %c0_20 = arith.constant 0 : index
    %c0_21 = arith.constant 0 : index
    %29 = vector.load %arg17[%c0_19, %c0_20, %c0_21] : memref<1x32x192xf32, #tpu.memory_space<vmem>>, vector<1x32x192xf32>
    %30 = vector.shape_cast %29 : vector<1x32x192xf32> to vector<32x192xf32>
    %31 = arith.addf %28, %30 : vector<32x192xf32>
    %cst_22 = arith.constant dense<0xFF800000> : vector<32xf32>
    %32 = vector.multi_reduction <maximumf>, %31, %cst_22 [1] : vector<32x192xf32> to vector<32xf32>
    %33 = vector.shape_cast %32 : vector<32xf32> to vector<32x1xf32>
    %34 = vector.broadcast %33 : vector<32x1xf32> to vector<32x192xf32>
    %35 = arith.subf %31, %34 : vector<32x192xf32>
    %36 = math.exp %35 : vector<32x192xf32>
    %cst_23 = arith.constant dense<0.000000e+00> : vector<32xf32>
    %37 = vector.multi_reduction <add>, %36, %cst_23 [1] : vector<32x192xf32> to vector<32xf32>
    %38 = vector.shape_cast %37 : vector<32xf32> to vector<32x1xf32>
    %39 = tpu.reciprocal %38 {approx = true} : vector<32x1xf32> -> vector<32x1xf32>
    %40 = vector.broadcast %39 : vector<32x1xf32> to vector<32x192xf32>
    %41 = arith.mulf %36, %40 : vector<32x192xf32>
    %42 = arith.truncf %41 : vector<32x192xf32> to vector<32x192xbf16>
    %43 = arith.truncf %21 : vector<192x32xf32> to vector<192x32xbf16>
    %cst_24 = arith.constant dense<0.000000e+00> : vector<32x32xf32>
    %44 = tpu.matmul %42, %43, %cst_24 {dimension_numbers = #tpu.dot_dimension_numbers<[1], [0], [0], [1], [0, 0, 1, 1], [], []>} : vector<32x192xbf16>, vector<192x32xbf16>, vector<32x32xf32> -> vector<32x32xf32>
    %45 = arith.truncf %44 : vector<32x32xf32> to vector<32x32xbf16>
    %c0_25 = arith.constant 0 : index
    %c0_26 = arith.constant 0 : index
    %c0_27 = arith.constant 0 : index
    %46 = vector.load %arg7[%c0_25, %c0_26, %c0_27] : memref<1x32x32xbf16, #tpu.memory_space<vmem>>, vector<1x32x32xbf16>
    %47 = vector.shape_cast %46 : vector<1x32x32xbf16> to vector<32x32xbf16>
    %cst_28 = arith.constant dense<0.000000e+00> : vector<32x32xf32>
    %48 = tpu.matmul %45, %47, %cst_28 {dimension_numbers = #tpu.dot_dimension_numbers<[1], [0], [0], [1], [0, 0, 1, 1], [], []>} : vector<32x32xbf16>, vector<32x32xbf16>, vector<32x32xf32> -> vector<32x32xf32>
    %c0_29 = arith.constant 0 : index
    %c0_30 = arith.constant 0 : index
    %c0_31 = arith.constant 0 : index
    %49 = vector.load %arg8[%c0_29, %c0_30, %c0_31] : memref<1x1x32xf32, #tpu.memory_space<vmem>>, vector<1x1x32xf32>
    %50 = vector.shape_cast %49 : vector<1x1x32xf32> to vector<1x32xf32>
    %51 = vector.broadcast %50 : vector<1x32xf32> to vector<32x32xf32>
    %52 = arith.addf %48, %51 : vector<32x32xf32>
    %53 = arith.addf %23, %52 : vector<32x32xf32>
    %c0_32 = arith.constant 0 : index
    %c0_33 = arith.constant 0 : index
    %c0_34 = arith.constant 0 : index
    %54 = vector.load %arg9[%c0_32, %c0_33, %c0_34] : memref<1x1x32xf32, #tpu.memory_space<vmem>>, vector<1x1x32xf32>
    %55 = vector.shape_cast %54 : vector<1x1x32xf32> to vector<1x32xf32>
    %c0_35 = arith.constant 0 : index
    %c0_36 = arith.constant 0 : index
    %c0_37 = arith.constant 0 : index
    %56 = vector.load %arg10[%c0_35, %c0_36, %c0_37] : memref<1x1x32xf32, #tpu.memory_space<vmem>>, vector<1x1x32xf32>
    %57 = vector.shape_cast %56 : vector<1x1x32xf32> to vector<1x32xf32>
    %cst_38 = arith.constant dense<0.000000e+00> : vector<32xf32>
    %58 = vector.multi_reduction <add>, %53, %cst_38 [1] : vector<32x32xf32> to vector<32xf32>
    %59 = vector.shape_cast %58 : vector<32xf32> to vector<32x1xf32>
    %cst_39 = arith.constant 3.200000e+01 : f32
    %60 = vector.broadcast %cst_39 : f32 to vector<32x1xf32>
    %61 = arith.divf %59, %60 : vector<32x1xf32>
    %62 = vector.broadcast %61 : vector<32x1xf32> to vector<32x32xf32>
    %63 = arith.subf %53, %62 : vector<32x32xf32>
    %64 = vector.broadcast %61 : vector<32x1xf32> to vector<32x32xf32>
    %65 = arith.subf %53, %64 : vector<32x32xf32>
    %66 = arith.mulf %63, %65 : vector<32x32xf32>
    %cst_40 = arith.constant dense<0.000000e+00> : vector<32xf32>
    %67 = vector.multi_reduction <add>, %66, %cst_40 [1] : vector<32x32xf32> to vector<32xf32>
    %68 = vector.shape_cast %67 : vector<32xf32> to vector<32x1xf32>
    %cst_41 = arith.constant 3.200000e+01 : f32
    %69 = vector.broadcast %cst_41 : f32 to vector<32x1xf32>
    %70 = arith.divf %68, %69 : vector<32x1xf32>
    %71 = vector.broadcast %61 : vector<32x1xf32> to vector<32x32xf32>
    %72 = arith.subf %53, %71 : vector<32x32xf32>
    %cst_42 = arith.constant 9.99999974E-6 : f32
    %73 = vector.broadcast %cst_42 : f32 to vector<32x1xf32>
    %74 = arith.addf %70, %73 : vector<32x1xf32>
    %75 = math.rsqrt %74 : vector<32x1xf32>
    %76 = vector.broadcast %75 : vector<32x1xf32> to vector<32x32xf32>
    %77 = arith.mulf %72, %76 : vector<32x32xf32>
    %78 = vector.broadcast %55 : vector<1x32xf32> to vector<32x32xf32>
    %79 = arith.mulf %77, %78 : vector<32x32xf32>
    %80 = vector.broadcast %57 : vector<1x32xf32> to vector<32x32xf32>
    %81 = arith.addf %79, %80 : vector<32x32xf32>
    %82 = arith.truncf %81 : vector<32x32xf32> to vector<32x32xbf16>
    %c0_43 = arith.constant 0 : index
    %c0_44 = arith.constant 0 : index
    %c0_45 = arith.constant 0 : index
    %83 = vector.load %arg11[%c0_43, %c0_44, %c0_45] : memref<1x32x128xbf16, #tpu.memory_space<vmem>>, vector<1x32x128xbf16>
    %84 = vector.shape_cast %83 : vector<1x32x128xbf16> to vector<32x128xbf16>
    %cst_46 = arith.constant dense<0.000000e+00> : vector<32x128xf32>
    %85 = tpu.matmul %82, %84, %cst_46 {dimension_numbers = #tpu.dot_dimension_numbers<[1], [0], [0], [1], [0, 0, 1, 1], [], []>} : vector<32x32xbf16>, vector<32x128xbf16>, vector<32x128xf32> -> vector<32x128xf32>
    %c0_47 = arith.constant 0 : index
    %c0_48 = arith.constant 0 : index
    %c0_49 = arith.constant 0 : index
    %86 = vector.load %arg12[%c0_47, %c0_48, %c0_49] : memref<1x1x128xf32, #tpu.memory_space<vmem>>, vector<1x1x128xf32>
    %87 = vector.shape_cast %86 : vector<1x1x128xf32> to vector<1x128xf32>
    %88 = vector.broadcast %87 : vector<1x128xf32> to vector<32x128xf32>
    %89 = arith.addf %85, %88 : vector<32x128xf32>
    %cst_50 = arith.constant 0.000000e+00 : f32
    %90 = vector.broadcast %cst_50 : f32 to vector<32x128xf32>
    %91 = arith.maximumf %89, %90 : vector<32x128xf32>
    %92 = arith.truncf %91 : vector<32x128xf32> to vector<32x128xbf16>
    %c0_51 = arith.constant 0 : index
    %c0_52 = arith.constant 0 : index
    %c0_53 = arith.constant 0 : index
    %93 = vector.load %arg13[%c0_51, %c0_52, %c0_53] : memref<1x128x32xbf16, #tpu.memory_space<vmem>>, vector<1x128x32xbf16>
    %94 = vector.shape_cast %93 : vector<1x128x32xbf16> to vector<128x32xbf16>
    %cst_54 = arith.constant dense<0.000000e+00> : vector<32x32xf32>
    %95 = tpu.matmul %92, %94, %cst_54 {dimension_numbers = #tpu.dot_dimension_numbers<[1], [0], [0], [1], [0, 0, 1, 1], [], []>} : vector<32x128xbf16>, vector<128x32xbf16>, vector<32x32xf32> -> vector<32x32xf32>
    %c0_55 = arith.constant 0 : index
    %c0_56 = arith.constant 0 : index
    %c0_57 = arith.constant 0 : index
    %96 = vector.load %arg14[%c0_55, %c0_56, %c0_57] : memref<1x1x32xf32, #tpu.memory_space<vmem>>, vector<1x1x32xf32>
    %97 = vector.shape_cast %96 : vector<1x1x32xf32> to vector<1x32xf32>
    %98 = vector.broadcast %97 : vector<1x32xf32> to vector<32x32xf32>
    %99 = arith.addf %95, %98 : vector<32x32xf32>
    %100 = arith.addf %81, %99 : vector<32x32xf32>
    %c0_58 = arith.constant 0 : index
    %c0_59 = arith.constant 0 : index
    %c0_60 = arith.constant 0 : index
    %101 = vector.load %arg15[%c0_58, %c0_59, %c0_60] : memref<1x1x32xf32, #tpu.memory_space<vmem>>, vector<1x1x32xf32>
    %102 = vector.shape_cast %101 : vector<1x1x32xf32> to vector<1x32xf32>
    %c0_61 = arith.constant 0 : index
    %c0_62 = arith.constant 0 : index
    %c0_63 = arith.constant 0 : index
    %103 = vector.load %arg16[%c0_61, %c0_62, %c0_63] : memref<1x1x32xf32, #tpu.memory_space<vmem>>, vector<1x1x32xf32>
    %104 = vector.shape_cast %103 : vector<1x1x32xf32> to vector<1x32xf32>
    %cst_64 = arith.constant dense<0.000000e+00> : vector<32xf32>
    %105 = vector.multi_reduction <add>, %100, %cst_64 [1] : vector<32x32xf32> to vector<32xf32>
    %106 = vector.shape_cast %105 : vector<32xf32> to vector<32x1xf32>
    %cst_65 = arith.constant 3.200000e+01 : f32
    %107 = vector.broadcast %cst_65 : f32 to vector<32x1xf32>
    %108 = arith.divf %106, %107 : vector<32x1xf32>
    %109 = vector.broadcast %108 : vector<32x1xf32> to vector<32x32xf32>
    %110 = arith.subf %100, %109 : vector<32x32xf32>
    %111 = vector.broadcast %108 : vector<32x1xf32> to vector<32x32xf32>
    %112 = arith.subf %100, %111 : vector<32x32xf32>
    %113 = arith.mulf %110, %112 : vector<32x32xf32>
    %cst_66 = arith.constant dense<0.000000e+00> : vector<32xf32>
    %114 = vector.multi_reduction <add>, %113, %cst_66 [1] : vector<32x32xf32> to vector<32xf32>
    %115 = vector.shape_cast %114 : vector<32xf32> to vector<32x1xf32>
    %cst_67 = arith.constant 3.200000e+01 : f32
    %116 = vector.broadcast %cst_67 : f32 to vector<32x1xf32>
    %117 = arith.divf %115, %116 : vector<32x1xf32>
    %118 = vector.broadcast %108 : vector<32x1xf32> to vector<32x32xf32>
    %119 = arith.subf %100, %118 : vector<32x32xf32>
    %cst_68 = arith.constant 9.99999974E-6 : f32
    %120 = vector.broadcast %cst_68 : f32 to vector<32x1xf32>
    %121 = arith.addf %117, %120 : vector<32x1xf32>
    %122 = math.rsqrt %121 : vector<32x1xf32>
    %123 = vector.broadcast %122 : vector<32x1xf32> to vector<32x32xf32>
    %124 = arith.mulf %119, %123 : vector<32x32xf32>
    %125 = vector.broadcast %102 : vector<1x32xf32> to vector<32x32xf32>
    %126 = arith.mulf %124, %125 : vector<32x32xf32>
    %127 = vector.broadcast %104 : vector<1x32xf32> to vector<32x32xf32>
    %128 = arith.addf %126, %127 : vector<32x32xf32>
    %c0_69 = arith.constant 0 : index
    %c0_70 = arith.constant 0 : index
    %c0_71 = arith.constant 0 : index
    %129 = vector.load %arg18[%c0_69, %c0_70, %c0_71] : memref<1x32x32xf32, #tpu.memory_space<vmem>>, vector<1x32x32xf32>
    %130 = vector.shape_cast %129 : vector<1x32x32xf32> to vector<32x32xf32>
    %131 = vector.shape_cast %128 : vector<32x32xf32> to vector<1x32x32xf32>
    tpu.vector_store %arg18[%c0_69, %c0_70, %c0_71], %131 {strides = array<i32>} : memref<1x32x32xf32, #tpu.memory_space<vmem>>, vector<1x32x32xf32>,
    return
  }
  func.func @transform_0(%arg0: i32) -> (i32, i32) {
    %c0_i32 = arith.constant 0 : i32
    %c0_i32_0 = arith.constant 0 : i32
    %c0_i32_1 = arith.constant 0 : i32
    return %c0_i32, %c0_i32_0 : i32, i32
  }
  func.func @transform_1(%arg0: i32) -> (i32, i32, i32) {
    %c0_i32 = arith.constant 0 : i32
    %c0_i32_0 = arith.constant 0 : i32
    %c0_i32_1 = arith.constant 0 : i32
    return %arg0, %c0_i32, %c0_i32_0 : i32, i32, i32
  }
  func.func @transform_2(%arg0: i32) -> (i32, i32, i32) {
    %c0_i32 = arith.constant 0 : i32
    %c0_i32_0 = arith.constant 0 : i32
    %c0_i32_1 = arith.constant 0 : i32
    return %arg0, %c0_i32, %c0_i32_0 : i32, i32, i32
  }
  func.func @transform_3(%arg0: i32) -> (i32, i32, i32) {
    %c0_i32 = arith.constant 0 : i32
    %c0_i32_0 = arith.constant 0 : i32
    %c0_i32_1 = arith.constant 0 : i32
    return %arg0, %c0_i32, %c0_i32_0 : i32, i32, i32
  }
  func.func @transform_4(%arg0: i32) -> (i32, i32, i32) {
    %c0_i32 = arith.constant 0 : i32
    %c0_i32_0 = arith.constant 0 : i32
    %c0_i32_1 = arith.constant 0 : i32
    return %arg0, %c0_i32, %c0_i32_0 : i32, i32, i32
  }
  func.func @transform_5(%arg0: i32) -> (i32, i32, i32) {
    %c0_i32 = arith.constant 0 : i32
    %c0_i32_0 = arith.constant 0 : i32
    %c0_i32_1 = arith.constant 0 : i32
    return %arg0, %c0_i32, %c0_i32_0 : i32, i32, i32
  }
  func.func @transform_6(%arg0: i32) -> (i32, i32, i32) {
    %c0_i32 = arith.constant 0 : i32
    %c0_i32_0 = arith.constant 0 : i32
    %c0_i32_1 = arith.constant 0 : i32
    return %arg0, %c0_i32, %c0_i32_0 : i32, i32, i32
  }
  func.func @transform_7(%arg0: i32) -> (i32, i32, i32) {
    %c0_i32 = arith.constant 0 : i32
    %c0_i32_0 = arith.constant 0 : i32
    %c0_i32_1 = arith.constant 0 : i32
    return %arg0, %c0_i32, %c0_i32_0 : i32, i32, i32
  }
  func.func @transform_8(%arg0: i32) -> (i32, i32, i32) {
    %c0_i32 = arith.constant 0 : i32
    %c0_i32_0 = arith.constant 0 : i32
    %c0_i32_1 = arith.constant 0 : i32
    return %arg0, %c0_i32, %c0_i32_0 : i32, i32, i32
  }
  func.func @transform_9(%arg0: i32) -> (i32, i32, i32) {
    %c0_i32 = arith.constant 0 : i32
    %c0_i32_0 = arith.constant 0 : i32
    %c0_i32_1 = arith.constant 0 : i32
    return %arg0, %c0_i32, %c0_i32_0 : i32, i32, i32
  }
  func.func @transform_10(%arg0: i32) -> (i32, i32, i32) {
    %c0_i32 = arith.constant 0 : i32
    %c0_i32_0 = arith.constant 0 : i32
    %c0_i32_1 = arith.constant 0 : i32
    return %arg0, %c0_i32, %c0_i32_0 : i32, i32, i32
  }
  func.func @transform_11(%arg0: i32) -> (i32, i32, i32) {
    %c0_i32 = arith.constant 0 : i32
    %c0_i32_0 = arith.constant 0 : i32
    %c0_i32_1 = arith.constant 0 : i32
    return %arg0, %c0_i32, %c0_i32_0 : i32, i32, i32
  }
  func.func @transform_12(%arg0: i32) -> (i32, i32, i32) {
    %c0_i32 = arith.constant 0 : i32
    %c0_i32_0 = arith.constant 0 : i32
    %c0_i32_1 = arith.constant 0 : i32
    return %arg0, %c0_i32, %c0_i32_0 : i32, i32, i32
  }
  func.func @transform_13(%arg0: i32) -> (i32, i32, i32) {
    %c0_i32 = arith.constant 0 : i32
    %c0_i32_0 = arith.constant 0 : i32
    %c0_i32_1 = arith.constant 0 : i32
    return %arg0, %c0_i32, %c0_i32_0 : i32, i32, i32
  }
  func.func @transform_14(%arg0: i32) -> (i32, i32, i32) {
    %c0_i32 = arith.constant 0 : i32
    %c0_i32_0 = arith.constant 0 : i32
    %c0_i32_1 = arith.constant 0 : i32
    return %arg0, %c0_i32, %c0_i32_0 : i32, i32, i32
  }
  func.func @transform_15(%arg0: i32) -> (i32, i32, i32) {
    %c0_i32 = arith.constant 0 : i32
    %c0_i32_0 = arith.constant 0 : i32
    %c0_i32_1 = arith.constant 0 : i32
    return %arg0, %c0_i32, %c0_i32_0 : i32, i32, i32
  }
  func.func @transform_16(%arg0: i32) -> (i32, i32, i32) {
    %c0_i32 = arith.constant 0 : i32
    %c0_i32_0 = arith.constant 0 : i32
    %c0_i32_1 = arith.constant 0 : i32
    return %arg0, %c0_i32, %c0_i32_0 : i32, i32, i32
  }
  func.func @transform_17(%arg0: i32) -> (i32, i32, i32) {
    %c0_i32 = arith.constant 0 : i32
    %c0_i32_0 = arith.constant 0 : i32
    %c0_i32_1 = arith.constant 0 : i32
    return %arg0, %c0_i32, %c0_i32_0 : i32, i32, i32
  }
}

module attributes {stable_mosaic.version = 11 : i64} {
  func.func @_backend_fused_kernel(%arg0: i32, %arg1: memref<32x24xf32, #tpu.memory_space<vmem>>, %arg2: memref<32x64xf32, #tpu.memory_space<vmem>>, %arg3: memref<24x64xbf16, #tpu.memory_space<vmem>>, %arg4: memref<1x64xf32, #tpu.memory_space<vmem>>, %arg5: memref<16x8xbf16, #tpu.memory_space<vmem>>, %arg6: memref<16x8xbf16, #tpu.memory_space<vmem>>, %arg7: memref<128x64xbf16, #tpu.memory_space<vmem>>, %arg8: memref<1x64xf32, #tpu.memory_space<vmem>>, %arg9: memref<64x8xbf16, #tpu.memory_space<vmem>>, %arg10: memref<1x8xf32, #tpu.memory_space<vmem>>, %arg11: memref<32x8xf32, #tpu.memory_space<vmem>>) attributes {dimension_semantics = [#tpu.dimension_semantics<arbitrary>], iteration_bounds = array<i64: 1>, scalar_prefetch = 0 : i64, scratch_operands = 0 : i64, tpu.core_type = #tpu.core_type<tc>, window_params = [{pipeline_mode = #tpu.pipeline_mode<synchronous>, transform_indices = @transform_0, window_bounds = array<i64: 32, 24>}, {pipeline_mode = #tpu.pipeline_mode<synchronous>, transform_indices = @transform_1, window_bounds = array<i64: 32, 64>}, {pipeline_mode = #tpu.pipeline_mode<synchronous>, transform_indices = @transform_2, window_bounds = array<i64: 24, 64>}, {pipeline_mode = #tpu.pipeline_mode<synchronous>, transform_indices = @transform_3, window_bounds = array<i64: 1, 64>}, {pipeline_mode = #tpu.pipeline_mode<synchronous>, transform_indices = @transform_4, window_bounds = array<i64: 16, 8>}, {pipeline_mode = #tpu.pipeline_mode<synchronous>, transform_indices = @transform_5, window_bounds = array<i64: 16, 8>}, {pipeline_mode = #tpu.pipeline_mode<synchronous>, transform_indices = @transform_6, window_bounds = array<i64: 128, 64>}, {pipeline_mode = #tpu.pipeline_mode<synchronous>, transform_indices = @transform_7, window_bounds = array<i64: 1, 64>}, {pipeline_mode = #tpu.pipeline_mode<synchronous>, transform_indices = @transform_8, window_bounds = array<i64: 64, 8>}, {pipeline_mode = #tpu.pipeline_mode<synchronous>, transform_indices = @transform_9, window_bounds = array<i64: 1, 8>}, {pipeline_mode = #tpu.pipeline_mode<synchronous>, transform_indices = @transform_10, window_bounds = array<i64: 32, 8>}]} {
    %c0 = arith.constant 0 : index
    %c0_0 = arith.constant 0 : index
    %0 = vector.load %arg1[%c0, %c0_0] : memref<32x24xf32, #tpu.memory_space<vmem>>, vector<32x24xf32>
    %1 = arith.truncf %0 : vector<32x24xf32> to vector<32x24xbf16>
    %c0_1 = arith.constant 0 : index
    %c0_2 = arith.constant 0 : index
    %2 = vector.load %arg3[%c0_1, %c0_2] : memref<24x64xbf16, #tpu.memory_space<vmem>>, vector<24x64xbf16>
    %cst = arith.constant dense<0.000000e+00> : vector<32x64xf32>
    %3 = tpu.matmul %1, %2, %cst {dimension_numbers = #tpu.dot_dimension_numbers<[1], [0], [0], [1], [0, 0, 1, 1], [], []>} : vector<32x24xbf16>, vector<24x64xbf16>, vector<32x64xf32> -> vector<32x64xf32>
    %c0_3 = arith.constant 0 : index
    %c0_4 = arith.constant 0 : index
    %4 = vector.load %arg4[%c0_3, %c0_4] : memref<1x64xf32, #tpu.memory_space<vmem>>, vector<1x64xf32>
    %5 = vector.broadcast %4 : vector<1x64xf32> to vector<32x64xf32>
    %6 = arith.addf %3, %5 : vector<32x64xf32>
    %cst_5 = arith.constant 0.000000e+00 : f32
    %7 = vector.broadcast %cst_5 : f32 to vector<32x64xf32>
    %8 = arith.maximumf %6, %7 : vector<32x64xf32>
    %c0_6 = arith.constant 0 : index
    %c0_7 = arith.constant 0 : index
    %9 = vector.load %arg5[%c0_6, %c0_7] : memref<16x8xbf16, #tpu.memory_space<vmem>>, vector<16x8xbf16>
    %c0_8 = arith.constant 0 : index
    %c0_9 = arith.constant 0 : index
    %10 = vector.load %arg6[%c0_8, %c0_9] : memref<16x8xbf16, #tpu.memory_space<vmem>>, vector<16x8xbf16>
    %cst_10 = arith.constant dense<0.000000e+00> : vector<16x16xf32>
    %11 = tpu.matmul %9, %10, %cst_10 {dimension_numbers = #tpu.dot_dimension_numbers<[1], [1], [0], [0], [0, 0, 1, 0], [], []>} : vector<16x8xbf16>, vector<16x8xbf16>, vector<16x16xf32> -> vector<16x16xf32>
    %cst_11 = arith.constant 0.000000e+00 : f32
    %12 = vector.broadcast %cst_11 : f32 to vector<16x16xf32>
    %13 = arith.maximumf %11, %12 : vector<16x16xf32>
    %cst_12 = arith.constant dense<0xFF800000> : vector<16xf32>
    %14 = vector.multi_reduction <maximumf>, %13, %cst_12 [1] : vector<16x16xf32> to vector<16xf32>
    %15 = vector.shape_cast %14 : vector<16xf32> to vector<16x1xf32>
    %16 = vector.broadcast %15 : vector<16x1xf32> to vector<16x16xf32>
    %17 = arith.subf %13, %16 : vector<16x16xf32>
    %18 = math.exp %17 : vector<16x16xf32>
    %cst_13 = arith.constant dense<0.000000e+00> : vector<16xf32>
    %19 = vector.multi_reduction <add>, %18, %cst_13 [1] : vector<16x16xf32> to vector<16xf32>
    %20 = vector.shape_cast %19 : vector<16xf32> to vector<16x1xf32>
    %21 = tpu.reciprocal %20 {approx = true} : vector<16x1xf32> -> vector<16x1xf32>
    %22 = vector.broadcast %21 : vector<16x1xf32> to vector<16x16xf32>
    %23 = arith.mulf %18, %22 : vector<16x16xf32>
    %24 = vector.extract_strided_slice %8 {offsets = [0, 0], sizes = [16, 64], strides = [1, 1]} : vector<32x64xf32> to vector<16x64xf32>
    %25 = arith.truncf %23 : vector<16x16xf32> to vector<16x16xbf16>
    %26 = arith.truncf %24 : vector<16x64xf32> to vector<16x64xbf16>
    %cst_14 = arith.constant dense<0.000000e+00> : vector<16x64xf32>
    %27 = tpu.matmul %25, %26, %cst_14 {dimension_numbers = #tpu.dot_dimension_numbers<[1], [0], [0], [1], [0, 0, 1, 1], [], []>} : vector<16x16xbf16>, vector<16x64xbf16>, vector<16x64xf32> -> vector<16x64xf32>
    %28 = vector.extract_strided_slice %8 {offsets = [16, 0], sizes = [16, 64], strides = [1, 1]} : vector<32x64xf32> to vector<16x64xf32>
    %29 = arith.truncf %23 : vector<16x16xf32> to vector<16x16xbf16>
    %30 = arith.truncf %28 : vector<16x64xf32> to vector<16x64xbf16>
    %cst_15 = arith.constant dense<0.000000e+00> : vector<16x64xf32>
    %31 = tpu.matmul %29, %30, %cst_15 {dimension_numbers = #tpu.dot_dimension_numbers<[1], [0], [0], [1], [0, 0, 1, 1], [], []>} : vector<16x16xbf16>, vector<16x64xbf16>, vector<16x64xf32> -> vector<16x64xf32>
    %32 = tpu.concatenate %27, %31 in 0 : vector<16x64xf32>, vector<16x64xf32> -> vector<32x64xf32>
    %33 = arith.addf %8, %32 : vector<32x64xf32>
    %cst_16 = arith.constant 0.000000e+00 : f32
    %34 = vector.broadcast %cst_16 : f32 to vector<32x64xf32>
    %35 = arith.maximumf %33, %34 : vector<32x64xf32>
    %c0_17 = arith.constant 0 : index
    %c0_18 = arith.constant 0 : index
    %36 = vector.load %arg2[%c0_17, %c0_18] : memref<32x64xf32, #tpu.memory_space<vmem>>, vector<32x64xf32>
    %37 = tpu.concatenate %35, %36 in 1 : vector<32x64xf32>, vector<32x64xf32> -> vector<32x128xf32>
    %38 = arith.truncf %37 : vector<32x128xf32> to vector<32x128xbf16>
    %c0_19 = arith.constant 0 : index
    %c0_20 = arith.constant 0 : index
    %39 = vector.load %arg7[%c0_19, %c0_20] : memref<128x64xbf16, #tpu.memory_space<vmem>>, vector<128x64xbf16>
    %cst_21 = arith.constant dense<0.000000e+00> : vector<32x64xf32>
    %40 = tpu.matmul %38, %39, %cst_21 {dimension_numbers = #tpu.dot_dimension_numbers<[1], [0], [0], [1], [0, 0, 1, 1], [], []>} : vector<32x128xbf16>, vector<128x64xbf16>, vector<32x64xf32> -> vector<32x64xf32>
    %c0_22 = arith.constant 0 : index
    %c0_23 = arith.constant 0 : index
    %41 = vector.load %arg8[%c0_22, %c0_23] : memref<1x64xf32, #tpu.memory_space<vmem>>, vector<1x64xf32>
    %42 = vector.broadcast %41 : vector<1x64xf32> to vector<32x64xf32>
    %43 = arith.addf %40, %42 : vector<32x64xf32>
    %cst_24 = arith.constant 0.000000e+00 : f32
    %44 = vector.broadcast %cst_24 : f32 to vector<32x64xf32>
    %45 = arith.maximumf %43, %44 : vector<32x64xf32>
    %46 = arith.truncf %45 : vector<32x64xf32> to vector<32x64xbf16>
    %c0_25 = arith.constant 0 : index
    %c0_26 = arith.constant 0 : index
    %47 = vector.load %arg9[%c0_25, %c0_26] : memref<64x8xbf16, #tpu.memory_space<vmem>>, vector<64x8xbf16>
    %cst_27 = arith.constant dense<0.000000e+00> : vector<32x8xf32>
    %48 = tpu.matmul %46, %47, %cst_27 {dimension_numbers = #tpu.dot_dimension_numbers<[1], [0], [0], [1], [0, 0, 1, 1], [], []>} : vector<32x64xbf16>, vector<64x8xbf16>, vector<32x8xf32> -> vector<32x8xf32>
    %c0_28 = arith.constant 0 : index
    %c0_29 = arith.constant 0 : index
    %49 = vector.load %arg10[%c0_28, %c0_29] : memref<1x8xf32, #tpu.memory_space<vmem>>, vector<1x8xf32>
    %50 = vector.broadcast %49 : vector<1x8xf32> to vector<32x8xf32>
    %51 = arith.addf %48, %50 : vector<32x8xf32>
    %c0_30 = arith.constant 0 : index
    %c0_31 = arith.constant 0 : index
    %52 = vector.load %arg11[%c0_30, %c0_31] : memref<32x8xf32, #tpu.memory_space<vmem>>, vector<32x8xf32>
    tpu.vector_store %arg11[%c0_30, %c0_31], %51 {strides = array<i32>} : memref<32x8xf32, #tpu.memory_space<vmem>>, vector<32x8xf32>,
    return
  }
  func.func @transform_0(%arg0: i32) -> (i32, i32) {
    %c0_i32 = arith.constant 0 : i32
    %c0_i32_0 = arith.constant 0 : i32
    %c0_i32_1 = arith.constant 0 : i32
    return %c0_i32, %c0_i32_0 : i32, i32
  }
  func.func @transform_1(%arg0: i32) -> (i32, i32) {
    %c0_i32 = arith.constant 0 : i32
    %c0_i32_0 = arith.constant 0 : i32
    %c0_i32_1 = arith.constant 0 : i32
    return %c0_i32, %c0_i32_0 : i32, i32
  }
  func.func @transform_2(%arg0: i32) -> (i32, i32) {
    %c0_i32 = arith.constant 0 : i32
    %c0_i32_0 = arith.constant 0 : i32
    %c0_i32_1 = arith.constant 0 : i32
    return %c0_i32, %c0_i32_0 : i32, i32
  }
  func.func @transform_3(%arg0: i32) -> (i32, i32) {
    %c0_i32 = arith.constant 0 : i32
    %c0_i32_0 = arith.constant 0 : i32
    %c0_i32_1 = arith.constant 0 : i32
    return %c0_i32, %c0_i32_0 : i32, i32
  }
  func.func @transform_4(%arg0: i32) -> (i32, i32) {
    %c0_i32 = arith.constant 0 : i32
    %c0_i32_0 = arith.constant 0 : i32
    %c0_i32_1 = arith.constant 0 : i32
    return %c0_i32, %c0_i32_0 : i32, i32
  }
  func.func @transform_5(%arg0: i32) -> (i32, i32) {
    %c0_i32 = arith.constant 0 : i32
    %c0_i32_0 = arith.constant 0 : i32
    %c0_i32_1 = arith.constant 0 : i32
    return %c0_i32, %c0_i32_0 : i32, i32
  }
  func.func @transform_6(%arg0: i32) -> (i32, i32) {
    %c0_i32 = arith.constant 0 : i32
    %c0_i32_0 = arith.constant 0 : i32
    %c0_i32_1 = arith.constant 0 : i32
    return %c0_i32, %c0_i32_0 : i32, i32
  }
  func.func @transform_7(%arg0: i32) -> (i32, i32) {
    %c0_i32 = arith.constant 0 : i32
    %c0_i32_0 = arith.constant 0 : i32
    %c0_i32_1 = arith.constant 0 : i32
    return %c0_i32, %c0_i32_0 : i32, i32
  }
  func.func @transform_8(%arg0: i32) -> (i32, i32) {
    %c0_i32 = arith.constant 0 : i32
    %c0_i32_0 = arith.constant 0 : i32
    %c0_i32_1 = arith.constant 0 : i32
    return %c0_i32, %c0_i32_0 : i32, i32
  }
  func.func @transform_9(%arg0: i32) -> (i32, i32) {
    %c0_i32 = arith.constant 0 : i32
    %c0_i32_0 = arith.constant 0 : i32
    %c0_i32_1 = arith.constant 0 : i32
    return %c0_i32, %c0_i32_0 : i32, i32
  }
  func.func @transform_10(%arg0: i32) -> (i32, i32) {
    %c0_i32 = arith.constant 0 : i32
    %c0_i32_0 = arith.constant 0 : i32
    %c0_i32_1 = arith.constant 0 : i32
    return %c0_i32, %c0_i32_0 : i32, i32
  }
}

</mosaic_0001>

<bundles_post_ra>
// kernel: stdmae_forward.3
= control target key start
LH: loop header
LB: loop body
LE: loop exit
PB: predicated region body
PF: predicated region fallthrough
CT: control target
= control target key end

     0   :  { %v711_v0 = vmov 0.0   ;;  %vm68_vm0 = vcmask 1043456   ;;  %vm61_vm1 = vcmask 195584   ;;  %vm712_vm2 = vmmov 0   ;;  %s713_s16 = smov 64   ;;  %s913_s2 = inlined_call_operand.vmem [shape: bf16[24,64], index: 2, kind: input, shape index: {}]   ;;  %s914_s0 = inlined_call_operand.vmem [shape: f32[32,24], index: 0, kind: input, shape index: {}]   ;;  %s915_s5 = inlined_call_operand.vmem [shape: bf16[16,8], index: 5, kind: input, shape index: {}]   ;;  %s916_s4 = inlined_call_operand.vmem [shape: bf16[16,8], index: 4, kind: input, shape index: {}]   ;;  %s917_s3 = inlined_call_operand.vmem [shape: f32[1,64], index: 3, kind: input, shape index: {}]   ;;  %s918_s1 = inlined_call_operand.vmem [shape: f32[32,64], index: 1, kind: input, shape index: {}]   ;;  %s919_s6 = inlined_call_operand.vmem [shape: bf16[128,64], index: 6, kind: input, shape index: {}]   ;;  %s920_s8 = inlined_call_operand.vmem [shape: bf16[64,8], index: 8, kind: input, shape index: {}]   ;;  %s921_s7 = inlined_call_operand.vmem [shape: f32[1,64], index: 7, kind: input, shape index: {}]   ;;  %s922_s9 = inlined_call_operand.vmem [shape: f32[1,8], index: 9, kind: input, shape index: {}]   ;;  %s923_s10 = inlined_call_operand.vmem [shape: f32[32,8], index: 10, kind: output, shape index: {}]  }
   0x1   :  { %629 = vmatprep.subr.bf16.mxu0 %v711_v0  ;;  %v687_v1 = vld [vmem:[%s913_s2] sm:$0xff]   ;;  %v688_v2 = vld [vmem:[%s913_s2 + $0x8] ss:$0 sps:$4 sm:$0xff]   ;;  %631 = vmatprep.mubr.msk.bf16.mxu0 %vm712_vm2, %v711_v0  ;;  %v38_v6 = vld [vmem:[%s914_s0 + $0x10] sm:$0xff]  ;;  %vm139_vm3 = vcmask 64512   ;;  %vm189_vm4 = vcmask 130048  }
   0x2   :  { %v36_v3 = vld [vmem:[%s914_s0] sm:$0xff]  ;;  %v37_v4 = vld [vmem:[%s914_s0 + $0x8] sm:$0xff]  ;;  %615 = vmatprep.subr.bf16.mxu1 %v687_v1  ;;  %v39_v7 = vld [vmem:[%s914_s0 + $0x18] sm:$0xff]  ;;  %v70_v8 = vsel %vm68_vm0, %v688_v2, 0  ;;  %vm328_vm5 = vcmask 523264  }
   0x3   :  { %v40_v5 = vpack.c.bf16 %v37_v4, %v36_v3  ;;  %616 = vmatpush3.bf16.msra.mxu1 %v687_v1  ;;  %v41_v9 = vpack.c.bf16 %v39_v7, %v38_v6  ;;  %v689_v10 = vld [vmem:[%s915_s5] sm:$0xff]   ;;  %v309_v47 = vld [vmem:[%s918_s1 + $0x8] sm:$0xff]  ;;  %v310_v48 = vld [vmem:[%s918_s1 + $0x10] sm:$0xff] }
   0x4   :  { %673 = vmatprep.subr.msk.bf16.mxu1 %vm68_vm0, %v688_v2  ;;  %v144_v11 = vsel %vm139_vm3, %v689_v10, 0  ;;  %v690_v12 = vld [vmem:[%s916_s4] sm:$0xff]   ;;  %v311_v50 = vld [vmem:[%s918_s1 + $0x18] sm:$0xff]  ;;  %v692_v60 = vld [vmem:[%s919_s6 + $0x8] sm:$0xff]  }
   0x5   :  { %619 = vmatprep.mubr.msk.bf16.mxu1 %vm61_vm1, %v40_v5  ;;  %v563_v13 = vld [vmem:[%s917_s3] ss:$0 sm:$0xff]  ;;  %v682_v51 = vpack.i.bf16 %v311_v50, %v310_v48  ;;  %v693_v61 = vld [vmem:[%s919_s6 + $0x10] sm:$0xff]   ;;  %v694_v62 = vld [vmem:[%s919_s6 + $0x18] sm:$0xff]  }
   0x6   :  { %v308_v46 = vld [vmem:[%s918_s1] sm:$0xff]  ;;  %v697_v1 = vld [vmem:[%s919_s6 + $0x30] sm:$0xff]   ;;  %v698_v2 = vld [vmem:[%s919_s6 + $0x38] sm:$0xff]  }
   0x7   :  { %618 = vmatpush3.bf16.msra.mxu1 %v70_v8  ;;  %v677_v49 = vpack.i.bf16 %v309_v47, %v308_v46  ;;  %v691_v52 = vld [vmem:[%s919_s6] sm:$0xff]   ;;  %v700_v4 = vld [vmem:[%s920_s8 + $0x8] sm:$0xff]  }
   0x8   :  { %623 = vmatprep.subr.bf16.mxu1 %v711_v0  ;;  %v695_v63 = vld [vmem:[%s919_s6 + $0x20] sm:$0xff]  }
   0x9   :  { %v699_v3 = vld [vmem:[%s920_s8] sm:$0xff]  }
   0xa   :  { %620 = vmatmul.mubr.msk.bf16.vlgmr.msra.gmra.mrb[0].mxu1 %vm61_vm1, %v41_v9  ;;  %v582_v50 = vld [vmem:[%s922_s9] ss:$0 sm:$0xff] }
   0xb   :  { %625 = vmatprep.mubr.msk.bf16.mxu1 %vm712_vm2, %v711_v0 }
  0x10   :  { %624 = vmatpush3.bf16.xpose.msra.mxu1 %v144_v11 }
  0x11   :  { %635 = vmatprep.subr.bf16.mxu1 %v711_v0 }
  0x17   :  { %626 = vmatmul.mubr.msk.bf16.vlgmr.msra.gmra.mrb[4].mxu1 %vm139_vm3, %v690_v12 }
  0x18   :  { %637 = vmatprep.mubr.msk.bf16.mxu1 %vm712_vm2, %v711_v0  ;;  %v696_v0 = vld [vmem:[%s919_s6 + $0x28] sm:$0xff]  }
  0xdd   :  { %v621_v14 = vpop.f32.mrb[0].mxu1 }
  0xde   :  { %v803_v15 = vadd.f32 %v621_v14, %v563_v13  ;;  %v106_v16 = vpop.f32.mrb[1].mxu1 }
  0xdf   :  { %v805_v17 = vadd.f32 %v563_v13, %v106_v16  ;;  %v622_v18 = vpop.f32.mrb[2].mxu1 }
  0xe0   :  { %v123_v19 = vmax.f32 %v803_v15, 0.0  ;;  %v808_v20 = vadd.f32 %v622_v18, %v563_v13  ;;  %v109_v21 = vpop.f32.mrb[3].mxu1 }
  0xe1   :  { %v121_v22 = vmax.f32 %v805_v17, 0.0  ;;  %v811_v23 = vadd.f32 %v563_v13, %v109_v21 }
  0xe2   :  { %v124_v24 = vmax.f32 %v808_v20, 0.0  ;;  %v701_v20 = vld [vmem:[%s920_s8 + $0x10] sm:$0xff]  }
  0xe3   :  { %v122_v25 = vmax.f32 %v811_v23, 0.0  ;;  %v702_v23 = vld [vmem:[%s920_s8 + $0x18] sm:$0xff]  }
  0xe4   :  { %v258_v26 = vpack.c.bf16 %v124_v24, %v123_v19 }
  0xe5   :  { %v213_v27 = vpack.c.bf16 %v122_v25, %v121_v22 }
  0xe6   :  { %636 = vmatpush3.bf16.msra.mxu1 %v258_v26 }
  0xe7   :  { %630 = vmatpush3.bf16.msra.mxu0 %v213_v27  ;;  %661 = vmatprep.subr.bf16.mxu1 %v699_v3 }
  0xe8   :  { %641 = vmatprep.subr.bf16.mxu0 %v691_v52 }
  0xea   :  { %v180_v28 = vpop.f32.mrb[4].mxu1 }
  0xeb   :  { %v187_v29 = vmax.f32 %v180_v28, 0.0  ;;  %v627_v30 = vpop.f32.mrb[5].mxu1 }
  0xec   :  { %v183_v31 = vpop.f32.mrb[6].mxu1 }
  0xed   :  { %v188_v32 = vmax.f32 %v183_v31, 0.0  ;;  %v628_v33 = vpop.f32.mrb[7].mxu1  ;;  %v190_v34 = vsel %vm189_vm4, %v187_v29, -inf }
  0xee   :  { %191 = vmax.xlane.f32.xlu0 %v190_v34 }
  0xef   :  { %v193_v35 = vsel %vm189_vm4, %v188_v32, -inf }
  0xf2   :  { %194 = vmax.xlane.f32.xlu0 %v193_v35 }
 0x108   :  { %678 = vrot.lane.b32.xlu0 %v677_v49, %s713_s16 }
 0x17b   :  { %v192_v36 = vpop.xlane.xlu0 %191 }
 0x17c   :  { %v196_v37 = vsub.f32 %v187_v29, %v192_v36 }
 0x17e   :  { %v198_v38 = vmul.f32 1.442695, %v196_v37 }
 0x17f   :  { %v195_v39 = vpop.xlane.xlu0 %194 }
 0x180   :  { %703 = vpow2.f32 %v198_v38  ;;  %v197_v40 = vsub.f32 %v188_v32, %v195_v39 }
 0x182   :  { %v200_v41 = vmul.f32 1.442695, %v197_v40 }
 0x183   :  { %v679_v6 = vpop.permute.xlu0 %678 }
 0x184   :  { %705 = vpow2.f32 %v200_v41  ;;  %v681_v16 = vunpack.i.h.bf16 %v679_v6  ;;  %v680_v18 = vunpack.i.l.bf16 %v679_v6 }
 0x18a   :  { %v704_v42 = vpop.eup %703 }
 0x18b   :  { %v202_v43 = vsel %vm189_vm4, %v704_v42, 0.0 }
 0x18c   :  { %203 = vadd.xlane.f32.xlu1 %v202_v43 }
 0x18e   :  { %v706_v44 = vpop.eup %705 }
 0x18f   :  { %v205_v45 = vsel %vm189_vm4, %v706_v44, 0.0 }
 0x190   :  { %206 = vadd.xlane.f32.xlu1 %v205_v45 }
 0x1a1   :  { %683 = vrot.lane.b32.xlu1 %v682_v51, %s713_s16 }
 0x219   :  { %v204_v53 = vpop.xlane.xlu1 %203 }
 0x21a   :  { %707 = vrcp.f32 %v204_v53 }
 0x21d   :  { %v207_v54 = vpop.xlane.xlu1 %206 }
 0x21e   :  { %709 = vrcp.f32 %v207_v54 }
 0x221   :  { %v684_v5 = vpop.permute.xlu1 %683 }
 0x222   :  { %v686_v13 = vunpack.i.h.bf16 %v684_v5  ;;  %v685_v14 = vunpack.i.l.bf16 %v684_v5 }
 0x224   :  { %v708_v55 = vpop.eup %707 }
 0x225   :  { %v210_v57 = vmul.f32 %v708_v55, %v704_v42 }
 0x228   :  { %v710_v56 = vpop.eup %709 }
 0x229   :  { %v211_v58 = vmul.f32 %v710_v56, %v706_v44 }
 0x22b   :  { %v212_v59 = vpack.c.bf16 %v211_v58, %v210_v57 }
 0x22d   :  { %632 = vmatmul.mubr.msk.bf16.vlgmr.msra.gmra.mrb[0].mxu0 %vm189_vm4, %v212_v59  ;;  %638 = vmatmul.mubr.msk.bf16.vlgmr.msra.gmra.mrb[8].mxu1 %vm189_vm4, %v212_v59 }
 0x22e   :  { %642 = vmatpush3.bf16.msra.mxu0 %v691_v52  ;;  %662 = vmatpush3.bf16.msra.mxu1 %v699_v3 }
 0x22f   :  { %643 = vmatprep.subr.bf16.mxu0 %v692_v60  ;;  %663 = vmatprep.subr.bf16.mxu1 %v700_v4 }
 0x232   :  { %644 = vmatpush3.bf16.msra.mxu0 %v692_v60  ;;  %664 = vmatpush3.bf16.msra.mxu1 %v700_v4 }
 0x233   :  { %645 = vmatprep.subr.bf16.mxu0 %v693_v61  ;;  %665 = vmatprep.subr.bf16.mxu1 %v701_v20 }
 0x236   :  { %646 = vmatpush3.bf16.msra.mxu0 %v693_v61  ;;  %666 = vmatpush3.bf16.msra.mxu1 %v701_v20 }
 0x237   :  { %647 = vmatprep.subr.bf16.mxu0 %v694_v62  ;;  %667 = vmatprep.subr.bf16.mxu1 %v702_v23 }
 0x23a   :  { %648 = vmatpush3.bf16.msra.mxu0 %v694_v62  ;;  %668 = vmatpush3.bf16.msra.mxu1 %v702_v23 }
 0x23b   :  { %649 = vmatprep.subr.bf16.mxu0 %v695_v63 }
 0x23e   :  { %650 = vmatpush3.bf16.msra.mxu0 %v695_v63 }
 0x23f   :  { %651 = vmatprep.subr.bf16.mxu0 %v696_v0 }
 0x242   :  { %652 = vmatpush3.bf16.msra.mxu0 %v696_v0 }
 0x243   :  { %653 = vmatprep.subr.bf16.mxu0 %v697_v1 }
 0x246   :  { %654 = vmatpush3.bf16.msra.mxu0 %v697_v1 }
 0x247   :  { %655 = vmatprep.subr.bf16.mxu0 %v698_v2 }
 0x24a   :  { %656 = vmatpush3.bf16.msra.mxu0 %v698_v2 }
 0x300   :  { %v251_v7 = vpop.f32.mrb[0].mxu0  ;;  %v293_v8 = vpop.f32.mrb[8].mxu1 }
 0x301   :  { %v300_v9 = vadd.f32 %v251_v7, %v121_v22  ;;  %v302_v10 = vadd.f32 %v293_v8, %v123_v19  ;;  %v633_v11 = vpop.f32.mrb[1].mxu0  ;;  %v639_v12 = vpop.f32.mrb[9].mxu1 }
 0x302   :  { %v254_v21 = vpop.f32.mrb[2].mxu0  ;;  %v296_v26 = vpop.f32.mrb[10].mxu1 }
 0x303   :  { %v304_v27 = vmax.f32 %v300_v9, 0.0  ;;  %v306_v28 = vmax.f32 %v302_v10, 0.0  ;;  %v301_v29 = vadd.f32 %v254_v21, %v122_v25  ;;  %v303_v17 = vadd.f32 %v296_v26, %v124_v24  ;;  %v634_v22 = vpop.f32.mrb[3].mxu0  ;;  %v640_v30 = vpop.f32.mrb[11].mxu1  ;;  %v573_v24 = vld [vmem:[%s921_s7] ss:$0 sm:$0xff] }
 0x305   :  { %v305_v15 = vmax.f32 %v301_v29, 0.0  ;;  %v307_v19 = vmax.f32 %v303_v17, 0.0  ;;  %v331_v31 = vsel %vm328_vm5, %v306_v28, %v685_v14  ;;  %v329_v33 = vsel %vm328_vm5, %v304_v27, %v680_v18 }
 0x307   :  { %v332_v32 = vsel %vm328_vm5, %v307_v19, %v686_v13  ;;  %v330_v34 = vsel %vm328_vm5, %v305_v15, %v681_v16 }
 0x308   :  { %v334_v35 = vpack.c.bf16 %v332_v32, %v331_v31  ;;  %v333_v36 = vpack.c.bf16 %v330_v34, %v329_v33 }
 0x30a   :  { %657 = vmatprep.mubr.bf16.mxu0 %v333_v36 }
 0x30b   :  { %658 = vmatmul.mubr.bf16.vlgmr.msra.gmra.mrb[4].mxu0 %v334_v35 }
 0x3de   :  { %v659_v25 = vpop.f32.mrb[4].mxu0 }
 0x3df   :  { %v449_v37 = vadd.f32 %v659_v25, %v573_v24  ;;  %v440_v38 = vpop.f32.mrb[5].mxu0 }
 0x3e0   :  { %v441_v39 = vadd.f32 %v573_v24, %v440_v38  ;;  %v660_v40 = vpop.f32.mrb[6].mxu0 }
 0x3e1   :  { %v452_v41 = vadd.f32 %v660_v40, %v573_v24  ;;  %v443_v42 = vpop.f32.mrb[7].mxu0  ;;  %v457_v44 = vmax.f32 %v449_v37, 0.0 }
 0x3e2   :  { %v444_v43 = vadd.f32 %v573_v24, %v443_v42  ;;  %v455_v46 = vmax.f32 %v441_v39, 0.0 }
 0x3e3   :  { %v458_v45 = vmax.f32 %v452_v41, 0.0 }
 0x3e4   :  { %v456_v47 = vmax.f32 %v444_v43, 0.0 }
 0x3e5   :  { %v460_v48 = vpack.c.bf16 %v458_v45, %v457_v44 }
 0x3e6   :  { %v459_v49 = vpack.c.bf16 %v456_v47, %v455_v46 }
 0x3e8   :  { %669 = vmatprep.mubr.msk.bf16.mxu1 %vm328_vm5, %v459_v49 }
 0x3e9   :  { %670 = vmatmul.mubr.msk.bf16.vlgmr.msra.gmra.mrb[12].mxu1 %vm328_vm5, %v460_v48 }
 0x4bc   :  { %v671_v51 = vpop.f32.mrb[12].mxu1 }
 0x4bd   :  { %v549_v52 = vadd.f32 %v671_v51, %v582_v50  ;;  %v540_v53 = vpop.f32.mrb[13].mxu1 }
 0x4be   :  { %v541_v54 = vadd.f32 %v582_v50, %v540_v53  ;;  %v672_v55 = vpop.f32.mrb[14].mxu1 }
 0x4bf   :  { %557 = vst.msk [vmem:[%s923_s10 + $0x10] sm:$0xff] %vm139_vm3, %v549_v52  ;;  %v552_v56 = vadd.f32 %v672_v55, %v582_v50  ;;  %v543_v57 = vpop.f32.mrb[15].mxu1 }
 0x4c0   :  { %555 = vst.msk [vmem:[%s923_s10] sm:$0xff] %vm139_vm3, %v541_v54  ;;  %v544_v58 = vadd.f32 %v582_v50, %v543_v57 }
 0x4c1   :  { %558 = vst.msk [vmem:[%s923_s10 + $0x18] sm:$0xff] %vm139_vm3, %v552_v56 }
 0x4c2   :  { %556 = vst.msk [vmem:[%s923_s10 + $0x8] sm:$0xff] %vm139_vm3, %v544_v58 }

// kernel: stdmae_forward.2
= control target key start
LH: loop header
LB: loop body
LE: loop exit
PB: predicated region body
PF: predicated region fallthrough
CT: control target
= control target key end

     0   :  { %s2627_s24 = smov 0   ;;  %s3092_s0 = inlined_call_operand.vmem [shape: f32[192,4], index: 0, kind: input, shape index: {}]   ;;  %s3093_s1 = inlined_call_operand.vmem [shape: f32[2,192,32], index: 1, kind: input, shape index: {}]   ;;  %s3094_s2 = inlined_call_operand.vmem [shape: bf16[2,4,32], index: 2, kind: input, shape index: {}]   ;;  %s3095_s3 = inlined_call_operand.vmem [shape: f32[2,1,32], index: 3, kind: input, shape index: {}]   ;;  %s3096_s4 = inlined_call_operand.vmem [shape: bf16[2,32,96], index: 4, kind: input, shape index: {}]   ;;  %s3097_s5 = inlined_call_operand.vmem [shape: f32[2,1,96], index: 5, kind: input, shape index: {}]   ;;  %s3098_s6 = inlined_call_operand.vmem [shape: bf16[2,32,32], index: 6, kind: input, shape index: {}]   ;;  %s3099_s7 = inlined_call_operand.vmem [shape: f32[2,1,32], index: 7, kind: input, shape index: {}]   ;;  %s3100_s8 = inlined_call_operand.vmem [shape: f32[2,1,32], index: 8, kind: input, shape index: {}]   ;;  %s3101_s9 = inlined_call_operand.vmem [shape: f32[2,1,32], index: 9, kind: input, shape index: {}]   ;;  %s3102_s10 = inlined_call_operand.vmem [shape: bf16[2,32,128], index: 10, kind: input, shape index: {}]   ;;  %s3103_s11 = inlined_call_operand.vmem [shape: f32[2,1,128], index: 11, kind: input, shape index: {}]   ;;  %s3104_s12 = inlined_call_operand.vmem [shape: bf16[2,128,32], index: 12, kind: input, shape index: {}]   ;;  %s3105_s13 = inlined_call_operand.vmem [shape: f32[2,1,32], index: 13, kind: input, shape index: {}]   ;;  %s3106_s14 = inlined_call_operand.vmem [shape: f32[2,1,32], index: 14, kind: input, shape index: {}]   ;;  %s3107_s15 = inlined_call_operand.vmem [shape: f32[2,1,32], index: 15, kind: input, shape index: {}]   ;;  %s3108_s16 = inlined_call_operand.vmem [shape: f32[2,32,192], index: 16, kind: input, shape index: {}]   ;;  %s3109_s17 = inlined_call_operand.vmem [shape: f32[2,32,32], index: 17, kind: output, shape index: {}]  }
   0x1   :  { %3111 = sst [smem:[#allocation2_spill]] %s3092_s0 }
   0x2   :  { %3112 = sst [smem:[#allocation3_spill]] %s3093_s1 }
   0x3 LB: > { %s2242_s25 = sadd.s32 4294967295, %s2532_s24   ;;  %p2246_p0 = scmp.ge.s32.totalorder %s2532_s24, 1  ;;  %s2532_s24 = sphi %s2627_s24, %s27_s24  }
   0x4   : > { %p618_p1 = scmp.lt.s32.totalorder %s2532_s24, 3 }
   0x6   : > { %p619_p2 = pnand %p2246_p0, %p618_p1 }
   0x7   : > { %p726_p3 = scmp.lt.s32.totalorder (!%p619_p2), %s2242_s25, 1  ;;  %s3113_s28 = sld [smem:[#allocation2_spill]] (!%p619_p2)  ;;  %vm837_vm0 = vcmask (!%p619_p2), 31744   ;;  %vm874_vm1 = vcmask (!%p619_p2), 1041408   ;;  %vm1090_vm2 = vcmask (!%p619_p2), 261120   ;;  %vm1423_vm3 = vcmask (!%p619_p2), 523264  }
   0x8   : > { %622 = sbr.rel (%p619_p2) target bundleno = 2744 (0xab8), region = 88  ;;  %s3114_s29 = sld [smem:[#allocation3_spill]] (!%p619_p2) }
   0xd   : > { %v793_v0 = vld [vmem:[%s3113_s28] sm:$0xff] (!%p619_p2)  ;;  %v794_v1 = vld [vmem:[%s3113_s28 + $0x8] sm:$0xff] (!%p619_p2)  ;;  %v795_v3 = vld [vmem:[%s3113_s28 + $0x10] sm:$0xff] (!%p619_p2) }
   0xe   : > { %v817_v2 = vpack.c.bf16 (!%p619_p2), %v794_v1, %v793_v0  ;;  %v796_v4 = vld [vmem:[%s3113_s28 + $0x18] sm:$0xff] (!%p619_p2)  ;;  %v797_v5 = vld [vmem:[%s3113_s28 + $0x20] sm:$0xff] (!%p619_p2)  ;;  %v798_v6 = vld [vmem:[%s3113_s28 + $0x28] sm:$0xff] (!%p619_p2) }
   0xf   : > { %s3116_s25 = smov (!%p726_p3, %s2242_s25), 1  ;;  %v818_v9 = vpack.c.bf16 %v796_v4, %v795_v3  ;;  %v819_v10 = vpack.c.bf16 %v798_v6, %v797_v5  ;;  %v799_v11 = vld [vmem:[%s3113_s28 + $0x30] sm:$0xff]  ;;  %v800_v12 = vld [vmem:[%s3113_s28 + $0x38] sm:$0xff]  ;;  %v801_v13 = vld [vmem:[%s3113_s28 + $0x40] sm:$0xff] }
  0x10   : > { %2371 = vmatprep.mubr.msk.bf16.mxu0 %vm837_vm0, %v817_v2  ;;  %s2248_s30 = sshll.u32 %s3116_s25, 1  ;;  %v802_v14 = vld [vmem:[%s3113_s28 + $0x48] sm:$0xff]  ;;  %v820_v15 = vpack.c.bf16 %v800_v12, %v799_v11  ;;  %v803_v17 = vld [vmem:[%s3113_s28 + $0x50] sm:$0xff]  ;;  %v804_v18 = vld [vmem:[%s3113_s28 + $0x58] sm:$0xff]  ;;  %s2726_s18 = sshll.u32 %s3116_s25, 4 }
  0x11   : > { %s734_s23 = scalar_lea.vmem %s3094_s2, %s2248_s30  ;;  %v821_v16 = vpack.c.bf16 %v802_v14, %v801_v13  ;;  %v805_v19 = vld [vmem:[%s3113_s28 + $0x60] sm:$0xff]  ;;  %v806_v20 = vld [vmem:[%s3113_s28 + $0x68] sm:$0xff]  ;;  %v822_v21 = vpack.c.bf16 %v804_v18, %v803_v17  ;;  %v807_v23 = vld [vmem:[%s3113_s28 + $0x70] sm:$0xff]  ;;  %s742_s1 = scalar_lea.vmem %s3096_s4, %s2726_s18 }
  0x12   : > { %v829_v7 = vld [vmem:[%s734_s23] sm:$0x3]  ;;  %v823_v22 = vpack.c.bf16 %v806_v20, %v805_v19  ;;  %v808_v24 = vld [vmem:[%s3113_s28 + $0x78] sm:$0xff]  ;;  %v810_v26 = vld [vmem:[%s3113_s28 + $0x88] sm:$0xff]  ;;  %s2460_s20 = smul.u32 192, %s3116_s25  ;;  %s737_s23 = scalar_lea.vmem %s3095_s3, %s3116_s25 }
  0x13   : > { %2459 = vmatprep.subr.msk.bf16.mxu0 %vm874_vm1, %v829_v7  ;;  %v876_v8 = vsel %vm874_vm1, %v829_v7, 0  ;;  %v809_v25 = vld [vmem:[%s3113_s28 + $0x80] sm:$0xff]  ;;  %v824_v27 = vpack.c.bf16 %v808_v24, %v807_v23  ;;  %v811_v29 = vld [vmem:[%s3113_s28 + $0x90] sm:$0xff]  ;;  %v812_v30 = vld [vmem:[%s3113_s28 + $0x98] sm:$0xff]  ;;  %s2321_s21 = sshll.u32 %s3116_s25, 6  ;;  %s2536_s30 = smov 64  }
  0x14   : > { %2370 = vmatpush3.bf16.msra.mxu0 %v876_v8  ;;  %v825_v28 = vpack.c.bf16 %v810_v26, %v809_v25  ;;  %v813_v31 = vld [vmem:[%s3113_s28 + $0xa0] sm:$0xff]  ;;  %v814_v32 = vld [vmem:[%s3113_s28 + $0xa8] sm:$0xff]  ;;  %v826_v33 = vpack.c.bf16 %v812_v30, %v811_v29  ;;  %v815_v35 = vld [vmem:[%s3113_s28 + $0xb0] sm:$0xff]  ;;  %s2742_s0 = scalar_lea.vmem %s3114_s29, %s2460_s20  ;;  %s2535_s20 = smov 96  }
  0x15   : > { %v827_v34 = vpack.c.bf16 %v814_v32, %v813_v31  ;;  %v816_v36 = vld [vmem:[%s3113_s28 + $0xb8] sm:$0xff]  ;;  %v2472_v38 = vld [vmem:[%s742_s1] sm:$0xff]   ;;  %v2473_v39 = vld [vmem:[%s742_s1 + $0x8] sm:$0xff]   ;;  %s745_s1 = scalar_lea.vmem %s3097_s5, %s3116_s25  ;;  %s2903_s26 = scalar_lea.vmem %s3104_s12, %s2321_s21 }
  0x16   : > { %v828_v37 = vpack.c.bf16 %v816_v36, %v815_v35  ;;  %2395 = vmatprep.subr.bf16.mxu1 %v2472_v38  ;;  %v2737_v40 = vld [vmem:[%s737_s23] ss:$0 sm:$0xff]  ;;  %v1009_v44 = vld [vmem:[%s2742_s0 + $0x10] sm:$0xff]  ;;  %v1010_v47 = vld [vmem:[%s2742_s0 + $0x18] sm:$0xff]  ;;  %s753_s23 = scalar_lea.vmem %s3099_s7, %s3116_s25  ;;  %s756_s19 = scalar_lea.vmem %s3100_s8, %s3116_s25 }
  0x17   : > { %2372 = vmatmul.mubr.msk.bf16.vlgmr.msra.gmra.mrb[0].mxu0 %vm837_vm0, %v818_v9  ;;  %2396 = vmatpush3.bf16.msra.mxu1 %v2472_v38  ;;  %v1007_v48 = vld [vmem:[%s2742_s0] sm:$0xff]  ;;  %v1008_v51 = vld [vmem:[%s2742_s0 + $0x8] sm:$0xff]  ;;  %v1013_v59 = vld [vmem:[%s2742_s0 + $0x30] sm:$0xff]  ;;  %s767_s27 = scalar_lea.vmem %s3103_s11, %s3116_s25  ;;  %s2323_s22 = sshll.u32 %s3116_s25, 5 }
  0x18   : > { %2375 = vmatprep.mubr.msk.bf16.mxu0 %vm837_vm0, %v819_v10  ;;  %2397 = vmatprep.subr.bf16.mxu1 %v2473_v39  ;;  %v1011_v63 = vld [vmem:[%s2742_s0 + $0x20] sm:$0xff]  ;;  %v1014_v2 = vld [vmem:[%s2742_s0 + $0x38] sm:$0xff]  ;;  %v1012_v6 = vld [vmem:[%s2742_s0 + $0x28] sm:$0xff] }
  0x19   : > { %v1017_v14 = vld [vmem:[%s2742_s0 + $0x50] sm:$0xff]  ;;  %v1015_v17 = vld [vmem:[%s2742_s0 + $0x40] sm:$0xff]  ;;  %v1018_v20 = vld [vmem:[%s2742_s0 + $0x58] sm:$0xff] }
  0x1a   : > { %v1016_v24 = vld [vmem:[%s2742_s0 + $0x48] sm:$0xff]  ;;  %v1021_v32 = vld [vmem:[%s2742_s0 + $0x70] sm:$0xff]  ;;  %v1019_v35 = vld [vmem:[%s2742_s0 + $0x60] sm:$0xff] }
  0x1b   : > { %2398 = vmatpush3.bf16.msra.mxu1 %v2473_v39  ;;  %v1022_v38 = vld [vmem:[%s2742_s0 + $0x78] sm:$0xff] }
  0x1f   : > { %2376 = vmatmul.mubr.msk.bf16.gmra.mrb[4].mxu0 %vm837_vm0, %v820_v15 }
  0x20   : > { %2379 = vmatprep.mubr.msk.bf16.mxu0 %vm837_vm0, %v821_v16 }
  0x27   : > { %2380 = vmatmul.mubr.msk.bf16.gmra.mrb[8].mxu0 %vm837_vm0, %v822_v21 }
  0x28   : > { %2383 = vmatprep.mubr.msk.bf16.mxu0 %vm837_vm0, %v823_v22 }
  0x2f   : > { %2384 = vmatmul.mubr.msk.bf16.gmra.mrb[12].mxu0 %vm837_vm0, %v824_v27 }
  0x30   : > { %2387 = vmatprep.mubr.msk.bf16.mxu0 %vm837_vm0, %v825_v28 }
  0x37   : > { %2388 = vmatmul.mubr.msk.bf16.gmra.mrb[16].mxu0 %vm837_vm0, %v826_v33 }
  0x38   : > { %2391 = vmatprep.mubr.msk.bf16.mxu0 %vm837_vm0, %v827_v34 }
  0x3f   : > { %2392 = vmatmul.mubr.msk.bf16.gmra.mrb[20].mxu0 %vm837_vm0, %v828_v37 }
  0xea   : > { %v2373_v41 = vpop.f32.mrb[0].mxu0 }
  0xeb   : > { %v921_v42 = vadd.f32 %v2373_v41, %v2737_v40  ;;  %v912_v43 = vpop.f32.mrb[1].mxu0 }
  0xec   : > { %v913_v45 = vadd.f32 %v2737_v40, %v912_v43  ;;  %v2374_v46 = vpop.f32.mrb[2].mxu0  ;;  %v1020_v43 = vld [vmem:[%s2742_s0 + $0x68] sm:$0xff] }
  0xed   : > { %v924_v49 = vadd.f32 %v2374_v46, %v2737_v40  ;;  %v915_v50 = vpop.f32.mrb[3].mxu0  ;;  %v1033_v53 = vadd.f32 %v1009_v44, %v921_v42 }
  0xee   : > { %v916_v52 = vadd.f32 %v2737_v40, %v915_v50  ;;  %v1031_v55 = vadd.f32 %v1007_v48, %v913_v45 }
  0xef   : > { %v1034_v54 = vadd.f32 %v1010_v47, %v924_v49 }
  0xf0   : > { %v1032_v56 = vadd.f32 %v1008_v51, %v916_v52  ;;  %v1025_v51 = vld [vmem:[%s2742_s0 + $0x90] sm:$0xff] }
  0xf1   : > { %v1056_v57 = vpack.c.bf16 %v1034_v54, %v1033_v53  ;;  %v1023_v54 = vld [vmem:[%s2742_s0 + $0x80] sm:$0xff] }
  0xf2   : > { %v2377_v58 = vpop.f32.mrb[4].mxu0  ;;  %v1055_v60 = vpack.c.bf16 %v1032_v56, %v1031_v55 }
  0xf3   : > { %v937_v61 = vadd.f32 %v2377_v58, %v2737_v40  ;;  %v928_v62 = vpop.f32.mrb[5].mxu0 }
  0xf4   : > { %v929_v0 = vadd.f32 %v2737_v40, %v928_v62  ;;  %v2378_v1 = vpop.f32.mrb[6].mxu0  ;;  %2399 = vmatprep.mubr.msk.bf16.mxu1 %vm1090_vm2, %v1055_v60 }
  0xf5   : > { %v1037_v3 = vadd.f32 %v1013_v59, %v937_v61  ;;  %v940_v4 = vadd.f32 %v2378_v1, %v2737_v40  ;;  %v931_v5 = vpop.f32.mrb[7].mxu0  ;;  %2400 = vmatmul.mubr.msk.bf16.vlgmr.msra.gmra.mrb[0].mxu1 %vm1090_vm2, %v1056_v57  ;;  %v1026_v57 = vld [vmem:[%s2742_s0 + $0x98] sm:$0xff]  ;;  %v1024_v61 = vld [vmem:[%s2742_s0 + $0x88] sm:$0xff] }
  0xf6   : > { %v1035_v7 = vadd.f32 %v1011_v63, %v929_v0  ;;  %v932_v8 = vadd.f32 %v2737_v40, %v931_v5  ;;  %v1029_v5 = vld [vmem:[%s2742_s0 + $0xb0] sm:$0xff] }
  0xf7   : > { %v1038_v9 = vadd.f32 %v1014_v2, %v940_v4 }
  0xf8   : > { %v1036_v10 = vadd.f32 %v1012_v6, %v932_v8  ;;  %v1027_v8 = vld [vmem:[%s2742_s0 + $0xa0] sm:$0xff] }
  0xf9   : > { %v1058_v11 = vpack.c.bf16 %v1038_v9, %v1037_v3 }
  0xfa   : > { %v1057_v12 = vpack.c.bf16 %v1036_v10, %v1035_v7  ;;  %v2381_v13 = vpop.f32.mrb[8].mxu0 }
  0xfb   : > { %v953_v15 = vadd.f32 %v2381_v13, %v2737_v40  ;;  %v944_v16 = vpop.f32.mrb[9].mxu0 }
  0xfc   : > { %2403 = vmatprep.mubr.msk.bf16.mxu1 %vm1090_vm2, %v1057_v12  ;;  %v945_v18 = vadd.f32 %v2737_v40, %v944_v16  ;;  %v2382_v19 = vpop.f32.mrb[10].mxu0 }
  0xfd   : > { %2404 = vmatmul.mubr.msk.bf16.gmra.mrb[4].mxu1 %vm1090_vm2, %v1058_v11  ;;  %v1041_v21 = vadd.f32 %v1017_v14, %v953_v15  ;;  %v956_v22 = vadd.f32 %v2382_v19, %v2737_v40  ;;  %v947_v23 = vpop.f32.mrb[11].mxu0  ;;  %v1030_v11 = vld [vmem:[%s2742_s0 + $0xb8] sm:$0xff]  ;;  %v1028_v15 = vld [vmem:[%s2742_s0 + $0xa8] sm:$0xff]  ;;  %s2938_s0 = scalar_lea.vmem %s3108_s16, %s2321_s21  ;;  %s759_s21 = scalar_lea.vmem %s3101_s9, %s3116_s25 }
  0xfe   : > { %v1039_v25 = vadd.f32 %v1015_v17, %v945_v18  ;;  %v948_v26 = vadd.f32 %v2737_v40, %v947_v23  ;;  %v2823_v23 = vld [vmem:[%s745_s1] ss:$0 sm:$0xff] }
  0xff   : > { %v1042_v27 = vadd.f32 %v1018_v20, %v956_v22  ;;  %v2534_v22 = vmov 0  }
 0x100   : > { %v1040_v28 = vadd.f32 %v1016_v24, %v948_v26  ;;  %1346 = vmatprep.subr.bf16.mxu0 %v2534_v22  ;;  %1378 = vmatprep.mubr.bf16.mxu0 %v2534_v22 }
 0x101   : > { %v1060_v29 = vpack.c.bf16 %v1042_v27, %v1041_v21  ;;  %1538 = vmatprep.subr.bf16.mxu1 %v2534_v22 }
 0x102   : > { %v1059_v30 = vpack.c.bf16 %v1040_v28, %v1039_v25  ;;  %v2385_v31 = vpop.f32.mrb[12].mxu0 }
 0x103   : > { %v969_v33 = vadd.f32 %v2385_v31, %v2737_v40  ;;  %v960_v34 = vpop.f32.mrb[13].mxu0 }
 0x104   : > { %2407 = vmatprep.mubr.msk.bf16.mxu1 %vm1090_vm2, %v1059_v30  ;;  %v961_v36 = vadd.f32 %v2737_v40, %v960_v34  ;;  %v2386_v37 = vpop.f32.mrb[14].mxu0 }
 0x105   : > { %2408 = vmatmul.mubr.msk.bf16.gmra.mrb[8].mxu1 %vm1090_vm2, %v1060_v29  ;;  %v1045_v39 = vadd.f32 %v1021_v32, %v969_v33  ;;  %v972_v41 = vadd.f32 %v2386_v37, %v2737_v40  ;;  %v963_v42 = vpop.f32.mrb[15].mxu0 }
 0x106   : > { %v1043_v44 = vadd.f32 %v1019_v35, %v961_v36  ;;  %v964_v45 = vadd.f32 %v2737_v40, %v963_v42 }
 0x107   : > { %v1046_v46 = vadd.f32 %v1022_v38, %v972_v41 }
 0x108   : > { %v1044_v47 = vadd.f32 %v1020_v43, %v964_v45 }
 0x109   : > { %v1062_v48 = vpack.c.bf16 %v1046_v46, %v1045_v39 }
 0x10a   : > { %v1061_v49 = vpack.c.bf16 %v1044_v47, %v1043_v44  ;;  %v2389_v50 = vpop.f32.mrb[16].mxu0 }
 0x10b   : > { %v985_v52 = vadd.f32 %v2389_v50, %v2737_v40  ;;  %v976_v53 = vpop.f32.mrb[17].mxu0 }
 0x10c   : > { %2411 = vmatprep.mubr.msk.bf16.mxu1 %vm1090_vm2, %v1061_v49  ;;  %v977_v55 = vadd.f32 %v2737_v40, %v976_v53  ;;  %v2390_v56 = vpop.f32.mrb[18].mxu0 }
 0x10d   : > { %2412 = vmatmul.mubr.msk.bf16.gmra.mrb[12].mxu1 %vm1090_vm2, %v1062_v48  ;;  %v1049_v58 = vadd.f32 %v1025_v51, %v985_v52  ;;  %v988_v59 = vadd.f32 %v2390_v56, %v2737_v40  ;;  %v979_v60 = vpop.f32.mrb[19].mxu0 }
 0x10e   : > { %v1047_v62 = vadd.f32 %v1023_v54, %v977_v55  ;;  %v980_v63 = vadd.f32 %v2737_v40, %v979_v60 }
 0x10f   : > { %v1050_v0 = vadd.f32 %v1026_v57, %v988_v59 }
 0x110   : > { %v1048_v1 = vadd.f32 %v1024_v61, %v980_v63 }
 0x111   : > { %v1064_v2 = vpack.c.bf16 %v1050_v0, %v1049_v58 }
 0x112   : > { %v1063_v3 = vpack.c.bf16 %v1048_v1, %v1047_v62  ;;  %v2393_v4 = vpop.f32.mrb[20].mxu0 }
 0x113   : > { %v1001_v6 = vadd.f32 %v2393_v4, %v2737_v40  ;;  %v992_v7 = vpop.f32.mrb[21].mxu0 }
 0x114   : > { %2415 = vmatprep.mubr.msk.bf16.mxu1 %vm1090_vm2, %v1063_v3  ;;  %v993_v9 = vadd.f32 %v2737_v40, %v992_v7  ;;  %v2394_v10 = vpop.f32.mrb[22].mxu0 }
 0x115   : > { %2416 = vmatmul.mubr.msk.bf16.gmra.mrb[16].mxu1 %vm1090_vm2, %v1064_v2  ;;  %v2799_v12 = vadd.f32 %v1029_v5, %v1001_v6  ;;  %v1004_v13 = vadd.f32 %v2394_v10, %v2737_v40  ;;  %v995_v14 = vpop.f32.mrb[23].mxu0 }
 0x116   : > { %v2803_v16 = vadd.f32 %v1027_v8, %v993_v9  ;;  %v996_v17 = vadd.f32 %v2737_v40, %v995_v14 }
 0x117   : > { %v2806_v18 = vadd.f32 %v1030_v11, %v1004_v13 }
 0x118   : > { %v2808_v19 = vadd.f32 %v1028_v15, %v996_v17 }
 0x119   : > { %v1066_v20 = vpack.c.bf16 %v2806_v18, %v2799_v12 }
 0x11a   : > { %v1065_v21 = vpack.c.bf16 %v2808_v19, %v2803_v16 }
 0x11c   : > { %2419 = vmatprep.mubr.msk.bf16.mxu1 %vm1090_vm2, %v1065_v21 }
 0x11d   : > { %2420 = vmatmul.mubr.msk.bf16.gmra.mrb[20].mxu1 %vm1090_vm2, %v1066_v20 }
 0x1c8   : > { %v2401_v40 = vpop.f32.mrb[0].mxu1 }
 0x1c9   : > { %v1161_v24 = vpop.f32.mrb[1].mxu1  ;;  %v1170_v26 = vadd.f32 %v2401_v40, %v2823_v23 }
 0x1ca   : > { %v2402_v25 = vpop.f32.mrb[2].mxu1  ;;  %v1162_v29 = vadd.f32 %v2823_v23, %v1161_v24 }
 0x1cb   : > { %v1173_v27 = vadd.f32 %v2402_v25, %v2823_v23  ;;  %v1164_v28 = vpop.f32.mrb[3].mxu1 }
 0x1cc   : > { %v1165_v30 = vadd.f32 %v2823_v23, %v1164_v28 }
 0x1cd   : > { %v2829_v31 = vpack.c.bf16 %v1173_v27, %v1170_v26 }
 0x1ce   : > { %v2831_v32 = vpack.c.bf16 %v1165_v30, %v1162_v29 }
 0x1d0   : > { %v2405_v33 = vpop.f32.mrb[4].mxu1  ;;  %1280 = vrot.lane.b32.xlu0 %v2831_v32, %s2535_s20 }
 0x1d1   : > { %v1186_v34 = vadd.f32 %v2405_v33, %v2823_v23  ;;  %v1177_v35 = vpop.f32.mrb[5].mxu1 }
 0x1d2   : > { %v1178_v36 = vadd.f32 %v2823_v23, %v1177_v35  ;;  %v2406_v37 = vpop.f32.mrb[6].mxu1 }
 0x1d3   : > { %v1189_v38 = vadd.f32 %v2406_v37, %v2823_v23  ;;  %v1180_v39 = vpop.f32.mrb[7].mxu1 }
 0x1d4   : > { %v1181_v41 = vadd.f32 %v2823_v23, %v1180_v39  ;;  %1282 = vrot.lane.b32.xlu0 %v2829_v31, %s2535_s20 }
 0x1d5   : > { %v2841_v42 = vpack.c.bf16 %v1189_v38, %v1186_v34 }
 0x1d6   : > { %v2843_v43 = vpack.c.bf16 %v1181_v41, %v1178_v36 }
 0x1d8   : > { %1284 = vrot.lane.b32.xlu1 %v2843_v43, %s2535_s20  ;;  %v2409_v44 = vpop.f32.mrb[8].mxu1 }
 0x1d9   : > { %v1202_v45 = vadd.f32 %v2409_v44, %v2823_v23  ;;  %v1193_v46 = vpop.f32.mrb[9].mxu1 }
 0x1da   : > { %v1194_v47 = vadd.f32 %v2823_v23, %v1193_v46  ;;  %v2410_v48 = vpop.f32.mrb[10].mxu1 }
 0x1db   : > { %v1205_v49 = vadd.f32 %v2410_v48, %v2823_v23  ;;  %v1196_v50 = vpop.f32.mrb[11].mxu1 }
 0x1dc   : > { %1286 = vrot.lane.b32.xlu1 %v2841_v42, %s2535_s20  ;;  %v1197_v51 = vadd.f32 %v2823_v23, %v1196_v50 }
 0x1dd   : > { %v2853_v52 = vpack.c.bf16 %v1205_v49, %v1202_v45 }
 0x1de   : > { %v2855_v53 = vpack.c.bf16 %v1197_v51, %v1194_v47 }
 0x1e0   : > { %1290 = vrot.lane.b32.xlu1 %v2853_v52, %s2535_s20  ;;  %1288 = vrot.lane.b32.xlu0 %v2855_v53, %s2535_s20  ;;  %v2413_v54 = vpop.f32.mrb[12].mxu1 }
 0x1e1   : > { %v1218_v55 = vadd.f32 %v2413_v54, %v2823_v23  ;;  %v1209_v56 = vpop.f32.mrb[13].mxu1 }
 0x1e2   : > { %v1210_v57 = vadd.f32 %v2823_v23, %v1209_v56  ;;  %v2414_v58 = vpop.f32.mrb[14].mxu1  ;;  %v1407_v56 = vld [vmem:[%s2938_s0] sm:$0xff] }
 0x1e3   : > { %v1221_v59 = vadd.f32 %v2414_v58, %v2823_v23  ;;  %v1212_v60 = vpop.f32.mrb[15].mxu1 }
 0x1e4   : > { %v1213_v61 = vadd.f32 %v2823_v23, %v1212_v60 }
 0x1e5   : > { %v2865_v62 = vpack.c.bf16 %v1221_v59, %v1218_v55  ;;  %v1408_v59 = vld [vmem:[%s2938_s0 + $0x8] sm:$0xff] }
 0x1e6   : > { %v2867_v63 = vpack.c.bf16 %v1213_v61, %v1210_v57 }
 0x1e7   : > { %1294 = vrot.lane.b32.xlu1 %v2865_v62, %s2535_s20 }
 0x1e8   : > { %1292 = vrot.lane.b32.xlu0 %v2867_v63, %s2535_s20  ;;  %v2417_v0 = vpop.f32.mrb[16].mxu1 }
 0x1e9   : > { %v1234_v1 = vadd.f32 %v2417_v0, %v2823_v23  ;;  %v1225_v2 = vpop.f32.mrb[17].mxu1  ;;  %v1409_v0 = vld [vmem:[%s2938_s0 + $0x10] sm:$0xff] }
 0x1ea   : > { %v1226_v3 = vadd.f32 %v2823_v23, %v1225_v2  ;;  %v2418_v4 = vpop.f32.mrb[18].mxu1 }
 0x1eb   : > { %v1237_v5 = vadd.f32 %v2418_v4, %v2823_v23  ;;  %v1228_v6 = vpop.f32.mrb[19].mxu1  ;;  %v1410_v4 = vld [vmem:[%s2938_s0 + $0x18] sm:$0xff] }
 0x1ec   : > { %v1229_v7 = vadd.f32 %v2823_v23, %v1228_v6 }
 0x1ed   : > { %v2877_v8 = vpack.c.bf16 %v1237_v5, %v1234_v1 }
 0x1ee   : > { %v2879_v9 = vpack.c.bf16 %v1229_v7, %v1226_v3 }
 0x1ef   : > { %1298 = vrot.lane.b32.xlu1 %v2877_v8, %s2535_s20 }
 0x1f0   : > { %1296 = vrot.lane.b32.xlu0 %v2879_v9, %s2535_s20  ;;  %v2421_v10 = vpop.f32.mrb[20].mxu1 }
 0x1f1   : > { %v1250_v11 = vadd.f32 %v2421_v10, %v2823_v23  ;;  %v1241_v13 = vpop.f32.mrb[21].mxu1 }
 0x1f2   : > { %v1242_v14 = vadd.f32 %v2823_v23, %v1241_v13  ;;  %v2422_v15 = vpop.f32.mrb[22].mxu1 }
 0x1f3   : > { %v1253_v17 = vadd.f32 %v2422_v15, %v2823_v23  ;;  %v1244_v20 = vpop.f32.mrb[23].mxu1  ;;  %v1411_v15 = vld [vmem:[%s2938_s0 + $0x20] sm:$0xff] }
 0x1f4   : > { %v1245_v21 = vadd.f32 %v2823_v23, %v1244_v20 }
 0x1f5   : > { %v2889_v40 = vpack.c.bf16 %v1253_v17, %v1250_v11 }
 0x1f6   : > { %v2891_v24 = vpack.c.bf16 %v1245_v21, %v1242_v14 }
 0x1f7   : > { %1302 = vrot.lane.b32.xlu1 %v2889_v40, %s2535_s20 }
 0x1f8   : > { %1300 = vrot.lane.b32.xlu0 %v2891_v24, %s2535_s20  ;;  %s3003_s20 = scalar_lea.vmem %s3098_s6, %s2726_s18 }
 0x242   : > { %v1281_v25 = vpop.permute.xlu0 %1280 }
 0x243   : > { %v1311_v23 = vsel %vm1090_vm2, %v1281_v25, 0  ;;  %v1412_v25 = vld [vmem:[%s2938_s0 + $0x28] sm:$0xff] }
 0x244   : > { %1347 = vmatpush1.bf16.xpose.msra.mxu0 %v1311_v23 }
 0x245   : > { %1348 = vmatprep.subr.bf16.mxu0 %v2534_v22 }
 0x246   : > { %v1283_v26 = vpop.permute.xlu0 %1282 }
 0x247   : > { %v1314_v27 = vsel %vm1090_vm2, %v1283_v26, 0 }
 0x24a   : > { %v1285_v28 = vpop.permute.xlu1 %1284 }
 0x24b   : > { %v1317_v29 = vsel %vm1090_vm2, %v1285_v28, 0  ;;  %v1413_v28 = vld [vmem:[%s2938_s0 + $0x30] sm:$0xff] }
 0x24c   : > { %1349 = vmatpush1.bf16.xpose.msra.mxu0 %v1314_v27 }
 0x24d   : > { %1350 = vmatprep.subr.bf16.mxu0 %v2534_v22 }
 0x24e   : > { %v1287_v30 = vpop.permute.xlu1 %1286 }
 0x24f   : > { %v1320_v33 = vsel %vm1090_vm2, %v1287_v30, 0 }
 0x252   : > { %v1289_v34 = vpop.permute.xlu0 %1288  ;;  %v1291_v36 = vpop.permute.xlu1 %1290 }
 0x253   : > { %v1323_v35 = vsel %vm1090_vm2, %v1289_v34, 0  ;;  %v1326_v37 = vsel %vm1090_vm2, %v1291_v36, 0  ;;  %v1414_v34 = vld [vmem:[%s2938_s0 + $0x38] sm:$0xff]  ;;  %s764_s0 = scalar_lea.vmem %s3102_s10, %s2726_s18 }
 0x254   : > { %1351 = vmatpush1.bf16.xpose.msra.mxu0 %v1317_v29 }
 0x255   : > { %1352 = vmatprep.subr.bf16.mxu0 %v2534_v22 }
 0x259   : > { %v1295_v41 = vpop.permute.xlu1 %1294 }
 0x25a   : > { %v1293_v38 = vpop.permute.xlu0 %1292  ;;  %v1332_v44 = vsel %vm1090_vm2, %v1295_v41, 0 }
 0x25b   : > { %v1329_v39 = vsel %vm1090_vm2, %v1293_v38, 0 }
 0x25c   : > { %1353 = vmatpush1.bf16.xpose.msra.mxu0 %v1320_v33 }
 0x25d   : > { %1354 = vmatprep.subr.bf16.mxu0 %v2534_v22 }
 0x261   : > { %v1299_v47 = vpop.permute.xlu1 %1298 }
 0x262   : > { %v1297_v45 = vpop.permute.xlu0 %1296  ;;  %v1338_v48 = vsel %vm1090_vm2, %v1299_v47, 0 }
 0x263   : > { %v1335_v46 = vsel %vm1090_vm2, %v1297_v45, 0 }
 0x264   : > { %1355 = vmatpush1.bf16.xpose.msra.mxu0 %v1323_v35 }
 0x265   : > { %1356 = vmatprep.subr.bf16.mxu0 %v2534_v22 }
 0x269   : > { %v1303_v51 = vpop.permute.xlu1 %1302 }
 0x26a   : > { %v1301_v49 = vpop.permute.xlu0 %1300  ;;  %v1344_v54 = vsel %vm1090_vm2, %v1303_v51, 0 }
 0x26b   : > { %v1341_v50 = vsel %vm1090_vm2, %v1301_v49, 0 }
 0x26c   : > { %1357 = vmatpush1.bf16.xpose.msra.mxu0 %v1326_v37 }
 0x26d   : > { %1358 = vmatprep.subr.bf16.mxu0 %v2534_v22 }
 0x274   : > { %1359 = vmatpush1.bf16.xpose.msra.mxu0 %v1329_v39 }
 0x275   : > { %1360 = vmatprep.subr.bf16.mxu0 %v2534_v22 }
 0x27c   : > { %1361 = vmatpush1.bf16.xpose.msra.mxu0 %v1332_v44 }
 0x27d   : > { %1362 = vmatprep.subr.bf16.mxu0 %v2534_v22 }
 0x284   : > { %1363 = vmatpush1.bf16.xpose.msra.mxu0 %v1335_v46 }
 0x285   : > { %1364 = vmatprep.subr.bf16.mxu0 %v2534_v22 }
 0x28c   : > { %1365 = vmatpush1.bf16.xpose.msra.mxu0 %v1338_v48 }
 0x28d   : > { %1366 = vmatprep.subr.bf16.mxu0 %v2534_v22 }
 0x294   : > { %1367 = vmatpush1.bf16.xpose.msra.mxu0 %v1341_v50 }
 0x295   : > { %1368 = vmatprep.subr.bf16.mxu0 %v2534_v22 }
 0x29c   : > { %1369 = vmatpush1.bf16.xpose.msra.mxu0 %v1344_v54 }
 0x2a3   : > { %2289 = vmatmul.mubr.msk.bf16.vlgmr.msra.gmra.mrb[24].mxu0 %vm1090_vm2, %v2891_v24 }
 0x2a4   : > { %1388 = vmatprep.mubr.bf16.mxu0 %v2534_v22 }
 0x2ab   : > { %2290 = vmatmul.mubr.msk.bf16.gmra.mrb[28].mxu0 %vm1090_vm2, %v2889_v40 }
 0x376   : > { %v1380_v55 = vpop.f32.mrb[24].mxu0 }
 0x377   : > { %v1399_v57 = vmul.f32 0.17677669, %v1380_v55  ;;  %v1382_v58 = vpop.f32.mrb[25].mxu0 }
 0x378   : > { %v1400_v60 = vmul.f32 0.17677669, %v1382_v58  ;;  %v1384_v61 = vpop.f32.mrb[26].mxu0 }
 0x379   : > { %v1415_v1 = vadd.f32 %v1407_v56, %v1399_v57  ;;  %v1401_v2 = vmul.f32 0.17677669, %v1384_v61  ;;  %v1386_v3 = vpop.f32.mrb[27].mxu0 }
 0x37a   : > { %v1416_v5 = vadd.f32 %v1408_v59, %v1400_v60  ;;  %v1402_v6 = vmul.f32 0.17677669, %v1386_v3 }
 0x37b   : > { %v1417_v7 = vadd.f32 %v1409_v0, %v1401_v2 }
 0x37c   : > { %v1418_v10 = vadd.f32 %v1410_v4, %v1402_v6  ;;  %v1424_v11 = vsel %vm1423_vm3, %v1416_v5, -inf }
 0x37d   : > { %v1425_v13 = vmax.f32 %v1415_v1, %v1424_v11 }
 0x37e   : > { %v1390_v14 = vpop.f32.mrb[28].mxu0  ;;  %v1428_v17 = vsel %vm1423_vm3, %v1418_v10, -inf }
 0x37f   : > { %v1403_v20 = vmul.f32 0.17677669, %v1390_v14  ;;  %1426 = vmax.xlane.f32.xlu0 %v1425_v13  ;;  %v1392_v21 = vpop.f32.mrb[29].mxu0  ;;  %v1429_v23 = vmax.f32 %v1417_v7, %v1428_v17 }
 0x380   : > { %v1404_v26 = vmul.f32 0.17677669, %v1392_v21  ;;  %v1394_v27 = vpop.f32.mrb[30].mxu0 }
 0x381   : > { %v1419_v29 = vadd.f32 %v1411_v15, %v1403_v20  ;;  %v1405_v30 = vmul.f32 0.17677669, %v1394_v27  ;;  %1430 = vmax.xlane.f32.xlu1 %v1429_v23  ;;  %v1396_v33 = vpop.f32.mrb[31].mxu0 }
 0x382   : > { %v1420_v35 = vadd.f32 %v1412_v25, %v1404_v26  ;;  %v1406_v36 = vmul.f32 0.17677669, %v1396_v33 }
 0x383   : > { %v1421_v37 = vadd.f32 %v1413_v28, %v1405_v30 }
 0x384   : > { %v1422_v38 = vadd.f32 %v1414_v34, %v1406_v36  ;;  %v1432_v39 = vsel %vm1423_vm3, %v1420_v35, -inf }
 0x385   : > { %v1433_v41 = vmax.f32 %v1419_v29, %v1432_v39 }
 0x386   : > { %v1436_v44 = vsel %vm1423_vm3, %v1422_v38, -inf }
 0x387   : > { %1434 = vmax.xlane.f32.xlu0 %v1433_v41  ;;  %v1437_v45 = vmax.f32 %v1421_v37, %v1436_v44  ;;  %v2474_v44 = vld [vmem:[%s3003_s20] sm:$0xff]  }
 0x38b   : > { %1438 = vmax.xlane.f32.xlu0 %v1437_v45 }
 0x392   : > { %1496 = vrot.lane.b32.xlu1 %v2831_v32, %s2536_s30 }
 0x396   : > { %1500 = vrot.lane.b32.xlu1 %v2843_v43, %s2536_s30 }
 0x39a   : > { %1502 = vrot.lane.b32.xlu1 %v2841_v42, %s2536_s30 }
 0x39e   : > { %1508 = vrot.lane.b32.xlu1 %v2867_v63, %s2536_s30 }
 0x3a1   : > { %1498 = vrot.lane.b32.xlu0 %v2829_v31, %s2536_s30 }
 0x3a2   : > { %1512 = vrot.lane.b32.xlu1 %v2879_v9, %s2536_s30 }
 0x3a5   : > { %1504 = vrot.lane.b32.xlu0 %v2855_v53, %s2536_s30 }
 0x3a6   : > { %1514 = vrot.lane.b32.xlu1 %v2877_v8, %s2536_s30 }
 0x3a9   : > { %1506 = vrot.lane.b32.xlu0 %v2853_v52, %s2536_s30 }
 0x3ad   : > { %1510 = vrot.lane.b32.xlu0 %v2865_v62, %s2536_s30 }
 0x40c   : > { %v1427_v32 = vpop.xlane.xlu0 %1426 }
 0x40d   : > { %v1440_v42 = vsub.f32 %v1415_v1, %v1427_v32  ;;  %v1441_v43 = vsub.f32 %v1416_v5, %v1427_v32 }
 0x40e   : > { %v1431_v63 = vpop.xlane.xlu1 %1430 }
 0x40f   : > { %v1448_v31 = vmul.f32 1.442695, %v1440_v42  ;;  %v1450_v46 = vmul.f32 1.442695, %v1441_v43  ;;  %v1442_v47 = vsub.f32 %v1417_v7, %v1431_v63  ;;  %v1443_v9 = vsub.f32 %v1418_v10, %v1431_v63 }
 0x411   : > { %2486 = vpow2.f32 %v1448_v31  ;;  %v1452_v48 = vmul.f32 1.442695, %v1442_v47  ;;  %v1454_v53 = vmul.f32 1.442695, %v1443_v9 }
 0x412   : > { %2488 = vpow2.f32 %v1450_v46  ;;  %v1497_v49 = vpop.permute.xlu1 %1496 }
 0x413   : > { %2490 = vpow2.f32 %v1452_v48  ;;  %1539 = vmatpush1.bf16.msra.mxu1 %v1497_v49 }
 0x414   : > { %2492 = vpow2.f32 %v1454_v53  ;;  %v1435_v52 = vpop.xlane.xlu0 %1434  ;;  %1540 = vmatprep.subr.bf16.mxu1 %v2534_v22  ;;  %v2475_v53 = vld [vmem:[%s3003_s20 + $0x8] sm:$0xff]  }
 0x415   : > { %v1444_v62 = vsub.f32 %v1419_v29, %v1435_v52  ;;  %v1445_v8 = vsub.f32 %v1420_v35, %v1435_v52 }
 0x416   : > { %v1501_v3 = vpop.permute.xlu1 %1500 }
 0x417   : > { %v1456_v50 = vmul.f32 1.442695, %v1444_v62  ;;  %v1458_v51 = vmul.f32 1.442695, %v1445_v8 }
 0x418   : > { %v1439_v54 = vpop.xlane.xlu0 %1438 }
 0x419   : > { %2494 = vpow2.f32 %v1456_v50  ;;  %v1446_v55 = vsub.f32 %v1421_v37, %v1439_v54  ;;  %v1447_v56 = vsub.f32 %v1422_v38, %v1439_v54 }
 0x41a   : > { %2496 = vpow2.f32 %v1458_v51  ;;  %v1503_v11 = vpop.permute.xlu1 %1502 }
 0x41b   : > { %v2973_v57 = vpop.eup %2486  ;;  %v1460_v58 = vmul.f32 1.442695, %v1446_v55  ;;  %v1462_v59 = vmul.f32 1.442695, %v1447_v56 }
 0x41c   : > { %v2489_v60 = vpop.eup %2488  ;;  %v1499_v61 = vpop.permute.xlu0 %1498 }
 0x41d   : > { %v2975_v0 = vpop.eup %2490  ;;  %2498 = vpow2.f32 %v1460_v58  ;;  %1541 = vmatpush1.bf16.msra.mxu1 %v1499_v61  ;;  %v1464_v1 = vsel %vm1423_vm3, %v2489_v60, 0.0  ;;  %v2293_v58 = vld [vmem:[%s753_s23] ss:$0 sm:$0xff] }
 0x41e   : > { %v2493_v2 = vpop.eup %2492  ;;  %2500 = vpow2.f32 %v1462_v59  ;;  %v1465_v4 = vadd.f32 %v2973_v57, %v1464_v1  ;;  %1542 = vmatprep.subr.bf16.mxu1 %v2534_v22  ;;  %v1509_v26 = vpop.permute.xlu1 %1508 }
 0x41f   : > { %v1468_v5 = vsel %vm1423_vm3, %v2493_v2, 0.0 }
 0x420   : > { %1466 = vadd.xlane.f32.xlu1 %v1465_v4  ;;  %v1469_v6 = vadd.f32 %v2975_v0, %v1468_v5  ;;  %v1505_v14 = vpop.permute.xlu0 %1504 }
 0x421   : > { %1543 = vmatpush1.bf16.msra.mxu1 %v1501_v3 }
 0x422   : > { %1470 = vadd.xlane.f32.xlu0 %v1469_v6  ;;  %1544 = vmatprep.subr.bf16.mxu1 %v2534_v22  ;;  %v1513_v28 = vpop.permute.xlu1 %1512 }
 0x423   : > { %v2983_v7 = vpop.eup %2494 }
 0x424   : > { %v2497_v10 = vpop.eup %2496  ;;  %v1507_v23 = vpop.permute.xlu0 %1506 }
 0x425   : > { %1545 = vmatpush1.bf16.msra.mxu1 %v1503_v11  ;;  %v1472_v13 = vsel %vm1423_vm3, %v2497_v10, 0.0 }
 0x426   : > { %v1473_v15 = vadd.f32 %v2983_v7, %v1472_v13  ;;  %1546 = vmatprep.subr.bf16.mxu1 %v2534_v22  ;;  %v1515_v29 = vpop.permute.xlu1 %1514 }
 0x427   : > { %v2499_v17 = vpop.eup %2498 }
 0x428   : > { %v2501_v20 = vpop.eup %2500  ;;  %1474 = vadd.xlane.f32.xlu1 %v1473_v15  ;;  %v1511_v27 = vpop.permute.xlu0 %1510 }
 0x429   : > { %1547 = vmatpush1.bf16.msra.mxu1 %v1505_v14  ;;  %v1476_v21 = vsel %vm1423_vm3, %v2501_v20, 0.0 }
 0x42a   : > { %v1477_v25 = vadd.f32 %v2499_v17, %v1476_v21  ;;  %1548 = vmatprep.subr.bf16.mxu1 %v2534_v22 }
 0x42c   : > { %1478 = vadd.xlane.f32.xlu0 %v1477_v25 }
 0x42d   : > { %1549 = vmatpush1.bf16.msra.mxu1 %v1507_v23 }
 0x42e   : > { %1550 = vmatprep.subr.bf16.mxu1 %v2534_v22 }
 0x431   : > { %1551 = vmatpush1.bf16.msra.mxu1 %v1509_v26 }
 0x432   : > { %1552 = vmatprep.subr.bf16.mxu1 %v2534_v22 }
 0x435   : > { %1553 = vmatpush1.bf16.msra.mxu1 %v1511_v27 }
 0x436   : > { %1554 = vmatprep.subr.bf16.mxu1 %v2534_v22 }
 0x439   : > { %1518 = vrot.lane.b32.xlu1 %v2889_v40, %s2536_s30  ;;  %1555 = vmatpush1.bf16.msra.mxu1 %v1513_v28 }
 0x43a   : > { %1556 = vmatprep.subr.bf16.mxu1 %v2534_v22 }
 0x43d   : > { %1557 = vmatpush1.bf16.msra.mxu1 %v1515_v29 }
 0x43e   : > { %1558 = vmatprep.subr.bf16.mxu1 %v2534_v22 }
 0x442   : > { %1516 = vrot.lane.b32.xlu0 %v2891_v24, %s2536_s30 }
 0x4ad   : > { %v1467_v30 = vpop.xlane.xlu1 %1466 }
 0x4ae   : > { %2502 = vrcp.f32 %v1467_v30 }
 0x4af   : > { %v1471_v33 = vpop.xlane.xlu0 %1470 }
 0x4b0   : > { %2504 = vrcp.f32 %v1471_v33 }
 0x4b5   : > { %v1475_v40 = vpop.xlane.xlu1 %1474 }
 0x4b6   : > { %2506 = vrcp.f32 %v1475_v40 }
 0x4b8   : > { %v2503_v34 = vpop.eup %2502 }
 0x4b9   : > { %v1479_v35 = vpop.xlane.xlu0 %1478  ;;  %v1485_v37 = vmul.f32 %v2503_v34, %v2489_v60  ;;  %v1484_v45 = vmul.f32 %v2503_v34, %v2973_v57  ;;  %v1519_v32 = vpop.permute.xlu1 %1518 }
 0x4ba   : > { %v2505_v36 = vpop.eup %2504  ;;  %2508 = vrcp.f32 %v1479_v35 }
 0x4bb   : > { %v1487_v38 = vmul.f32 %v2505_v36, %v2493_v2  ;;  %v1486_v41 = vmul.f32 %v2505_v36, %v2975_v0 }
 0x4bd   : > { %v1517_v39 = vpop.permute.xlu0 %1516  ;;  %v1493_v24 = vpack.c.bf16 %v1487_v38, %v1485_v37  ;;  %v1492_v43 = vpack.c.bf16 %v1486_v41, %v1484_v45  ;;  %v2476_v38 = vld [vmem:[%s764_s0] sm:$0xff]  }
 0x4be   : > { %1559 = vmatpush1.bf16.msra.mxu1 %v1517_v39  ;;  %v2477_v39 = vld [vmem:[%s764_s0 + $0x8] sm:$0xff]   ;;  %s775_s0 = scalar_lea.vmem %s3105_s13, %s3116_s25 }
 0x4bf   : > { %2291 = vmatprep.mubr.msk.bf16.mxu1 %vm1423_vm3, %v1493_v24  ;;  %1560 = vmatprep.subr.bf16.mxu1 %v2534_v22  ;;  %v2478_v24 = vld [vmem:[%s2903_s26] sm:$0xff]  }
 0x4c0   : > { %v2507_v42 = vpop.eup %2506 }
 0x4c1   : > { %v1489_v31 = vmul.f32 %v2507_v42, %v2497_v10  ;;  %v1488_v22 = vmul.f32 %v2507_v42, %v2983_v7 }
 0x4c2   : > { %1561 = vmatpush1.bf16.msra.mxu1 %v1519_v32 }
 0x4c3   : > { %2423 = vmatprep.subr.bf16.mxu1 %v2474_v44 }
 0x4c4   : > { %v2509_v63 = vpop.eup %2508 }
 0x4c5   : > { %1571 = vmatmul.mubr.bf16.vlgmr.msra.gmra.mrb[24].mxu1 %v1492_v43  ;;  %v1491_v46 = vmul.f32 %v2509_v63, %v2501_v20  ;;  %v1490_v9 = vmul.f32 %v2509_v63, %v2499_v17 }
 0x4c6   : > { %2424 = vmatpush3.bf16.msra.mxu1 %v2474_v44 }
 0x4c7   : > { %v1495_v47 = vpack.c.bf16 %v1491_v46, %v1489_v31  ;;  %v1494_v48 = vpack.c.bf16 %v1490_v9, %v1488_v22  ;;  %2425 = vmatprep.subr.bf16.mxu1 %v2475_v53 }
 0x4c9   : > { %2292 = vmatprep.mubr.msk.bf16.mxu1 %vm1423_vm3, %v1495_v47 }
 0x4ca   : > { %2426 = vmatpush3.bf16.msra.mxu1 %v2475_v53  ;;  %v2298_v53 = vld [vmem:[%s756_s19] ss:$0 sm:$0xff]  ;;  %s778_s19 = scalar_lea.vmem %s3106_s14, %s3116_s25 }
 0x4cb   : > { %2431 = vmatprep.subr.bf16.mxu1 %v2476_v38 }
 0x4cd   : > { %1579 = vmatmul.mubr.bf16.gmra.mrb[28].mxu1 %v1494_v48 }
 0x598   : > { %v1572_v49 = vpop.f32.mrb[24].mxu1 }
 0x599   : > { %v1574_v52 = vpop.f32.mrb[25].mxu1 }
 0x59a   : > { %v1575_v62 = vpop.f32.mrb[26].mxu1 }
 0x59b   : > { %v1587_v8 = vpack.c.bf16 %v1575_v62, %v1572_v49  ;;  %v1577_v50 = vpop.f32.mrb[27].mxu1 }
 0x59d   : > { %2427 = vmatprep.mubr.msk.bf16.mxu1 %vm1090_vm2, %v1587_v8 }
 0x5a0   : > { %v1580_v51 = vpop.f32.mrb[28].mxu1 }
 0x5a1   : > { %v1582_v54 = vpop.f32.mrb[29].mxu1 }
 0x5a2   : > { %v1583_v55 = vpop.f32.mrb[30].mxu1 }
 0x5a3   : > { %v1588_v56 = vpack.c.bf16 %v1583_v55, %v1580_v51  ;;  %v1585_v57 = vpop.f32.mrb[31].mxu1  ;;  %v2299_v51 = vld [vmem:[%s759_s21] ss:$0 sm:$0xff]  ;;  %s781_s21 = scalar_lea.vmem %s3107_s15, %s3116_s25 }
 0x5a5   : > { %2428 = vmatmul.mubr.msk.bf16.vlgmr.msra.gmra.mrb[32].mxu1 %vm1090_vm2, %v1588_v56 }
 0x5a6   : > { %2432 = vmatpush3.bf16.msra.mxu1 %v2476_v38 }
 0x5a7   : > { %2433 = vmatprep.subr.bf16.mxu1 %v2477_v39 }
 0x5aa   : > { %2434 = vmatpush3.bf16.msra.mxu1 %v2477_v39 }
 0x5ab   : > { %2439 = vmatprep.subr.bf16.mxu1 %v2478_v24 }
 0x678   : > { %v2429_v59 = vpop.f32.mrb[32].mxu1 }
 0x679   : > { %v1652_v60 = vpop.f32.mrb[33].mxu1  ;;  %v1661_v61 = vadd.f32 %v2429_v59, %v2293_v58 }
 0x67a   : > { %v1653_v0 = vadd.f32 %v2293_v58, %v1652_v60  ;;  %v2430_v1 = vpop.f32.mrb[34].mxu1 }
 0x67b   : > { %v1655_v2 = vpop.f32.mrb[35].mxu1  ;;  %v1664_v5 = vadd.f32 %v2430_v1, %v2293_v58  ;;  %v1669_v10 = vadd.f32 %v1661_v61, %v2799_v12 }
 0x67c   : > { %v1656_v3 = vadd.f32 %v2293_v58, %v1655_v2  ;;  %v1667_v4 = vadd.f32 %v1653_v0, %v2803_v16 }
 0x67d   : > { %v1679_v13 = vsel %vm1090_vm2, %v1669_v10, 0.0  ;;  %v1670_v14 = vadd.f32 %v1664_v5, %v2806_v18  ;;  %v2480_v5 = vld [vmem:[%s2903_s26 + $0x10] sm:$0xff]  }
 0x67e   : > { %v1673_v6 = vsel %vm1090_vm2, %v1667_v4, 0.0  ;;  %v1668_v7 = vadd.f32 %v1656_v3, %v2808_v19 }
 0x67f   : > { %1674 = vadd.xlane.f32.xlu0 %v1673_v6  ;;  %v1682_v15 = vsel %vm1090_vm2, %v1670_v14, 0.0  ;;  %v2481_v6 = vld [vmem:[%s2903_s26 + $0x18] sm:$0xff]  }
 0x680   : > { %v1676_v11 = vsel %vm1090_vm2, %v1668_v7, 0.0 }
 0x681   : > { %1677 = vadd.xlane.f32.xlu1 %v1676_v11  ;;  %v2484_v11 = vld [vmem:[%s2903_s26 + $0x30] sm:$0xff]  }
 0x683   : > { %1680 = vadd.xlane.f32.xlu0 %v1679_v13  ;;  %v2485_v13 = vld [vmem:[%s2903_s26 + $0x38] sm:$0xff]  }
 0x687   : > { %1683 = vadd.xlane.f32.xlu0 %v1682_v15 }
 0x70c   : > { %v1675_v16 = vpop.xlane.xlu0 %1674 }
 0x70d   : > { %v1686_v17 = vmul.f32 0.03125, %v1675_v16 }
 0x70e   : > { %v1678_v20 = vpop.xlane.xlu1 %1677 }
 0x70f   : > { %v1690_v21 = vsub.f32 %v1667_v4, %v1686_v17  ;;  %v1687_v25 = vmul.f32 0.03125, %v1678_v20  ;;  %v2479_v4 = vld [vmem:[%s2903_s26 + $0x8] sm:$0xff]  }
 0x710   : > { %v1681_v19 = vpop.xlane.xlu0 %1680 }
 0x711   : > { %v1691_v23 = vsub.f32 %v1668_v7, %v1687_v25  ;;  %v1688_v12 = vmul.f32 0.03125, %v1681_v19  ;;  %v1694_v26 = vmul.f32 %v1690_v21, %v1690_v21  ;;  %v2482_v7 = vld [vmem:[%s2903_s26 + $0x20] sm:$0xff]  }
 0x713   : > { %v1692_v27 = vsub.f32 %v1669_v10, %v1688_v12  ;;  %v1698_v28 = vsel %vm1090_vm2, %v1694_v26, 0.0  ;;  %v1695_v29 = vmul.f32 %v1691_v23, %v1691_v23  ;;  %v2483_v10 = vld [vmem:[%s2903_s26 + $0x28] sm:$0xff]   ;;  %s791_s26 = scalar_lea.vmem %s3109_s17, %s2323_s22 }
 0x714   : > { %1699 = vadd.xlane.f32.xlu1 %v1698_v28  ;;  %v1684_v18 = vpop.xlane.xlu0 %1683 }
 0x715   : > { %v1689_v30 = vmul.f32 0.03125, %v1684_v18  ;;  %v1701_v33 = vsel %vm1090_vm2, %v1695_v29, 0.0  ;;  %v1696_v40 = vmul.f32 %v1692_v27, %v1692_v27 }
 0x716   : > { %1702 = vadd.xlane.f32.xlu0 %v1701_v33 }
 0x717   : > { %v1693_v34 = vsub.f32 %v1670_v14, %v1689_v30  ;;  %v1704_v35 = vsel %vm1090_vm2, %v1696_v40, 0.0  ;;  %v2300_v14 = vld [vmem:[%s767_s27] ss:$0 sm:$0xff] }
 0x718   : > { %1705 = vadd.xlane.f32.xlu1 %v1704_v35  ;;  %v2305_v30 = vld [vmem:[%s775_s0] ss:$0 sm:$0xff] }
 0x719   : > { %v1697_v36 = vmul.f32 %v1693_v34, %v1693_v34 }
 0x71b   : > { %v1707_v37 = vsel %vm1090_vm2, %v1697_v36, 0.0 }
 0x71c   : > { %1708 = vadd.xlane.f32.xlu0 %v1707_v37 }
 0x7a1   : > { %v1700_v41 = vpop.xlane.xlu1 %1699 }
 0x7a2   : > { %v1710_v44 = vmul.f32 0.03125, %v1700_v41 }
 0x7a3   : > { %v1703_v45 = vpop.xlane.xlu0 %1702 }
 0x7a4   : > { %v1714_v32 = vadd.f32 1e-05, %v1710_v44  ;;  %v1711_v42 = vmul.f32 0.03125, %v1703_v45 }
 0x7a5   : > { %v1706_v43 = vpop.xlane.xlu1 %1705 }
 0x7a6   : > { %2510 = vrsqrt.f32 %v1714_v32  ;;  %v1715_v63 = vadd.f32 1e-05, %v1711_v42  ;;  %v1712_v31 = vmul.f32 0.03125, %v1706_v43 }
 0x7a8   : > { %2512 = vrsqrt.f32 %v1715_v63  ;;  %v1716_v46 = vadd.f32 1e-05, %v1712_v31 }
 0x7a9   : > { %v1709_v47 = vpop.xlane.xlu0 %1708 }
 0x7aa   : > { %2514 = vrsqrt.f32 %v1716_v46  ;;  %v1713_v9 = vmul.f32 0.03125, %v1709_v47 }
 0x7ac   : > { %v1717_v22 = vadd.f32 1e-05, %v1713_v9 }
 0x7ae   : > { %2516 = vrsqrt.f32 %v1717_v22 }
 0x7b0   : > { %v2511_v48 = vpop.eup %2510 }
 0x7b1   : > { %v1722_v49 = vmul.f32 %v2511_v48, %v1690_v21 }
 0x7b2   : > { %v2513_v52 = vpop.eup %2512 }
 0x7b3   : > { %v1723_v62 = vmul.f32 %v2513_v52, %v1691_v23  ;;  %v1732_v8 = vmul.f32 %v2298_v53, %v1722_v49 }
 0x7b4   : > { %v2515_v50 = vpop.eup %2514 }
 0x7b5   : > { %v1724_v54 = vmul.f32 %v2515_v50, %v1692_v27  ;;  %v1733_v55 = vmul.f32 %v2298_v53, %v1723_v62  ;;  %v1742_v56 = vadd.f32 %v2299_v51, %v1732_v8 }
 0x7b7   : > { %v3044_v57 = vadd.f32 %v2299_v51, %v1733_v55  ;;  %v1734_v59 = vmul.f32 %v2298_v53, %v1724_v54 }
 0x7b8   : > { %v2517_v58 = vpop.eup %2516 }
 0x7b9   : > { %v1725_v60 = vmul.f32 %v2517_v58, %v1693_v34  ;;  %v1746_v61 = vpack.c.bf16 %v3044_v57, %v1742_v56  ;;  %v1744_v1 = vadd.f32 %v2299_v51, %v1734_v59 }
 0x7bb   : > { %v1735_v0 = vmul.f32 %v2298_v53, %v1725_v60  ;;  %2435 = vmatprep.mubr.msk.bf16.mxu1 %vm1090_vm2, %v1746_v61 }
 0x7bd   : > { %v1745_v2 = vadd.f32 %v2299_v51, %v1735_v0 }
 0x7bf   : > { %v1747_v3 = vpack.c.bf16 %v1745_v2, %v1744_v1 }
 0x7c1   : > { %2436 = vmatmul.mubr.msk.bf16.vlgmr.msra.gmra.mrb[36].mxu1 %vm1090_vm2, %v1747_v3 }
 0x7c2   : > { %2440 = vmatpush3.bf16.msra.mxu1 %v2478_v24 }
 0x7c3   : > { %2441 = vmatprep.subr.bf16.mxu1 %v2479_v4 }
 0x7c6   : > { %2442 = vmatpush3.bf16.msra.mxu1 %v2479_v4 }
 0x7c7   : > { %2443 = vmatprep.subr.bf16.mxu1 %v2480_v5 }
 0x7ca   : > { %2444 = vmatpush3.bf16.msra.mxu1 %v2480_v5 }
 0x7cb   : > { %2445 = vmatprep.subr.bf16.mxu1 %v2481_v6 }
 0x7ce   : > { %2446 = vmatpush3.bf16.msra.mxu1 %v2481_v6 }
 0x7cf   : > { %2447 = vmatprep.subr.bf16.mxu1 %v2482_v7 }
 0x7d2   : > { %2448 = vmatpush3.bf16.msra.mxu1 %v2482_v7 }
 0x7d3   : > { %2449 = vmatprep.subr.bf16.mxu1 %v2483_v10 }
 0x7d6   : > { %2450 = vmatpush3.bf16.msra.mxu1 %v2483_v10 }
 0x7d7   : > { %2451 = vmatprep.subr.bf16.mxu1 %v2484_v11 }
 0x7da   : > { %2452 = vmatpush3.bf16.msra.mxu1 %v2484_v11 }
 0x7db   : > { %2453 = vmatprep.subr.bf16.mxu1 %v2485_v13 }
 0x7de   : > { %2454 = vmatpush3.bf16.msra.mxu1 %v2485_v13 }
 0x894   : > { %v2437_v15 = vpop.f32.mrb[36].mxu1 }
 0x895   : > { %v1820_v16 = vadd.f32 %v2437_v15, %v2300_v14  ;;  %v1811_v17 = vpop.f32.mrb[37].mxu1  ;;  %v2314_v15 = vld [vmem:[%s778_s19] ss:$0 sm:$0xff] }
 0x896   : > { %v1812_v20 = vadd.f32 %v2300_v14, %v1811_v17  ;;  %v2438_v21 = vpop.f32.mrb[38].mxu1 }
 0x897   : > { %v1823_v25 = vadd.f32 %v2438_v21, %v2300_v14  ;;  %v1814_v19 = vpop.f32.mrb[39].mxu1  ;;  %v1828_v12 = vmax.f32 %v1820_v16, 0.0 }
 0x898   : > { %v1815_v23 = vadd.f32 %v2300_v14, %v1814_v19  ;;  %v1826_v27 = vmax.f32 %v1812_v20, 0.0  ;;  %v2315_v20 = vld [vmem:[%s781_s21] ss:$0 sm:$0xff] }
 0x899   : > { %v1829_v26 = vmax.f32 %v1823_v25, 0.0 }
 0x89a   : > { %v1827_v28 = vmax.f32 %v1815_v23, 0.0 }
 0x89b   : > { %v1831_v29 = vpack.c.bf16 %v1829_v26, %v1828_v12 }
 0x89c   : > { %v1830_v18 = vpack.c.bf16 %v1827_v28, %v1826_v27 }
 0x89e   : > { %2455 = vmatprep.mubr.bf16.mxu1 %v1830_v18 }
 0x89f   : > { %2456 = vmatmul.mubr.bf16.vlgmr.msra.gmra.mrb[40].mxu1 %v1831_v29 }
 0x972   : > { %v2457_v33 = vpop.f32.mrb[40].mxu1 }
 0x973   : > { %v1937_v40 = vpop.f32.mrb[41].mxu1  ;;  %v1946_v34 = vadd.f32 %v2457_v33, %v2305_v30 }
 0x974   : > { %v1938_v35 = vadd.f32 %v2305_v30, %v1937_v40  ;;  %v2458_v36 = vpop.f32.mrb[42].mxu1 }
 0x975   : > { %v1940_v37 = vpop.f32.mrb[43].mxu1  ;;  %v1949_v38 = vadd.f32 %v2458_v36, %v2305_v30  ;;  %v1954_v45 = vadd.f32 %v1946_v34, %v1744_v1 }
 0x976   : > { %v1941_v39 = vadd.f32 %v2305_v30, %v1940_v37  ;;  %v1952_v24 = vadd.f32 %v1938_v35, %v1742_v56 }
 0x977   : > { %v1955_v42 = vadd.f32 %v1949_v38, %v1745_v2  ;;  %v1964_v43 = vsel %vm1090_vm2, %v1954_v45, 0.0 }
 0x978   : > { %v1958_v41 = vsel %vm1090_vm2, %v1952_v24, 0.0  ;;  %v1953_v44 = vadd.f32 %v1941_v39, %v3044_v57 }
 0x979   : > { %1959 = vadd.xlane.f32.xlu1 %v1958_v41  ;;  %v1967_v63 = vsel %vm1090_vm2, %v1955_v42, 0.0 }
 0x97a   : > { %v1961_v32 = vsel %vm1090_vm2, %v1953_v44, 0.0 }
 0x97b   : > { %1962 = vadd.xlane.f32.xlu0 %v1961_v32 }
 0x97d   : > { %1965 = vadd.xlane.f32.xlu1 %v1964_v43 }
 0x97f   : > { %1968 = vadd.xlane.f32.xlu0 %v1967_v63 }
 0xa06   : > { %v1960_v31 = vpop.xlane.xlu1 %1959 }
 0xa07   : > { %v1970_v46 = vmul.f32 0.03125, %v1960_v31 }
 0xa08   : > { %v1963_v47 = vpop.xlane.xlu0 %1962 }
 0xa09   : > { %v1974_v9 = vsub.f32 %v1952_v24, %v1970_v46  ;;  %v1971_v22 = vmul.f32 0.03125, %v1963_v47 }
 0xa0a   : > { %v1966_v48 = vpop.xlane.xlu1 %1965 }
 0xa0b   : > { %v1975_v53 = vsub.f32 %v1953_v44, %v1971_v22  ;;  %v1972_v49 = vmul.f32 0.03125, %v1966_v48  ;;  %v1978_v52 = vmul.f32 %v1974_v9, %v1974_v9 }
 0xa0c   : > { %v1969_v62 = vpop.xlane.xlu0 %1968 }
 0xa0d   : > { %v1976_v8 = vsub.f32 %v1954_v45, %v1972_v49  ;;  %v1973_v50 = vmul.f32 0.03125, %v1969_v62  ;;  %v1982_v51 = vsel %vm1090_vm2, %v1978_v52, 0.0  ;;  %v1979_v54 = vmul.f32 %v1975_v53, %v1975_v53 }
 0xa0e   : > { %1983 = vadd.xlane.f32.xlu1 %v1982_v51 }
 0xa0f   : > { %v1977_v55 = vsub.f32 %v1955_v42, %v1973_v50  ;;  %v1985_v56 = vsel %vm1090_vm2, %v1979_v54, 0.0  ;;  %v1980_v57 = vmul.f32 %v1976_v8, %v1976_v8 }
 0xa10   : > { %1986 = vadd.xlane.f32.xlu0 %v1985_v56 }
 0xa11   : > { %v1988_v58 = vsel %vm1090_vm2, %v1980_v57, 0.0  ;;  %v1981_v59 = vmul.f32 %v1977_v55, %v1977_v55 }
 0xa12   : > { %1989 = vadd.xlane.f32.xlu1 %v1988_v58 }
 0xa13   : > { %v1991_v60 = vsel %vm1090_vm2, %v1981_v59, 0.0 }
 0xa14   : > { %1992 = vadd.xlane.f32.xlu0 %v1991_v60 }
 0xa9b   : > { %v1984_v61 = vpop.xlane.xlu1 %1983 }
 0xa9c   : > { %v1994_v0 = vmul.f32 0.03125, %v1984_v61 }
 0xa9d   : > { %v1987_v1 = vpop.xlane.xlu0 %1986 }
 0xa9e   : > { %v1998_v2 = vadd.f32 1e-05, %v1994_v0  ;;  %v1995_v3 = vmul.f32 0.03125, %v1987_v1 }
 0xa9f   : > { %v1990_v4 = vpop.xlane.xlu1 %1989 }
 0xaa0   : > { %2518 = vrsqrt.f32 %v1998_v2  ;;  %v1999_v5 = vadd.f32 1e-05, %v1995_v3  ;;  %v1996_v6 = vmul.f32 0.03125, %v1990_v4 }
 0xaa1   : > { %v1993_v7 = vpop.xlane.xlu0 %1992 }
 0xaa2   : > { %2520 = vrsqrt.f32 %v1999_v5  ;;  %v2000_v10 = vadd.f32 1e-05, %v1996_v6  ;;  %v1997_v11 = vmul.f32 0.03125, %v1993_v7 }
 0xaa4   : > { %2522 = vrsqrt.f32 %v2000_v10  ;;  %v2001_v13 = vadd.f32 1e-05, %v1997_v11 }
 0xaa6   : > { %2524 = vrsqrt.f32 %v2001_v13 }
 0xaaa   : > { %v2519_v14 = vpop.eup %2518 }
 0xaab   : > { %v2006_v16 = vmul.f32 %v2519_v14, %v1974_v9 }
 0xaac   : > { %v2521_v17 = vpop.eup %2520 }
 0xaad   : > { %v2016_v21 = vmul.f32 %v2314_v15, %v2006_v16  ;;  %v2007_v25 = vmul.f32 %v2521_v17, %v1975_v53 }
 0xaae   : > { %v2523_v19 = vpop.eup %2522 }
 0xaaf   : > { %v2026_v23 = vadd.f32 %v2315_v20, %v2016_v21  ;;  %v2017_v12 = vmul.f32 %v2314_v15, %v2007_v25  ;;  %v2008_v26 = vmul.f32 %v2523_v19, %v1976_v8 }
 0xab0   : > { %v2525_v27 = vpop.eup %2524 }
 0xab1   : > { %2030 = vst.msk [vmem:[%s791_s26] sm:$0xff] %vm1090_vm2, %v2026_v23  ;;  %v2027_v28 = vadd.f32 %v2315_v20, %v2017_v12  ;;  %v2018_v29 = vmul.f32 %v2314_v15, %v2008_v26  ;;  %v2009_v18 = vmul.f32 %v2525_v27, %v1977_v55 }
 0xab3   : > { %2031 = vst.msk [vmem:[%s791_s26 + $0x8] sm:$0xff] %vm1090_vm2, %v2027_v28  ;;  %v2028_v30 = vadd.f32 %v2315_v20, %v2018_v29  ;;  %v2019_v33 = vmul.f32 %v2314_v15, %v2009_v18 }
 0xab5   : > { %2032 = vst.msk [vmem:[%s791_s26 + $0x10] sm:$0xff] %vm1090_vm2, %v2028_v30  ;;  %v2029_v40 = vadd.f32 %v2315_v20, %v2019_v33 }
 0xab7   : > { %2033 = vst.msk [vmem:[%s791_s26 + $0x18] sm:$0xff] %vm1090_vm2, %v2029_v40 }
 0xab8 PF: > { %s27_s24 = sadd.s32 1, %s2532_s24  }
 0xab9   : > { %p24_p4 = scmp.ge.s32.totalorder %s27_s24, 4  }
 0xabb   :  { %26 = sbr.rel (!%p24_p4) target bundleno = 3 (0x3), region = 163 }

</bundles_post_ra>
